<compile_context>
chip_gen: v6e
topology: v6e:2x2x1
jax: 0.10.0
libtpu: 0.0.40
codegen_flags: <defaults>
</compile_context>

<pallas_src>
import functools
import math

import jax
import jax.numpy as jnp
from jax import lax
from jax.experimental import pallas as pl
from jax.experimental.pallas import tpu as pltpu

_NEG_INF = -1e9
_LN_EPS = 1e-6


# ---------------------------------------------------------------------------
# in-kernel helpers
# ---------------------------------------------------------------------------
def _layer_norm(z, g, b, eps=_LN_EPS):
    # torch: a2 * (x - mean) / (std + eps) + b2, std unbiased (N-1), eps on std.
    # NOTE: do NOT "optimize" to rsqrt(var + eps) -- that changes semantics.
    d = z.shape[-1]
    mean = jnp.mean(z, axis=-1, keepdims=True)
    var = jnp.sum((z - mean) ** 2, axis=-1, keepdims=True) * (1.0 / (d - 1))
    inv = pl.reciprocal(jnp.sqrt(var) + eps, approx=True)      # EUP, not VALU
    return g * (z - mean) * inv + b


def _softmax_last(x):
    m = jnp.max(x, axis=-1, keepdims=True)
    e = jnp.exp(x - m)
    return e * pl.reciprocal(jnp.sum(e, axis=-1, keepdims=True), approx=True)


def _mm(a, w_ref):
    # MXU matmul with f32 accumulation; activations cast to the weight dtype
    # (f32 by default, bf16 when compute_dtype=jnp.bfloat16).
    return jnp.dot(a.astype(w_ref.dtype), w_ref[...],
                   preferred_element_type=jnp.float32)


# ---------------------------------------------------------------------------
# kernel
# ---------------------------------------------------------------------------
def encoder_layer_kernel(
    x_ref, mask_ref,
    wq_ref, bq_ref, wk_ref, bk_ref, wv_ref, bv_ref, wo_ref, bo_ref,
    w1_ref, b1_ref, w2_ref, b2_ref,
    g1_ref, be1_ref, g2_ref, be2_ref,
    o_ref,
    k_scr, v_scr,
    *, num_heads, q_tile):
    qt = pl.program_id(1)
    S = x_ref.shape[1]
    D = x_ref.shape[2]
    dk = D // num_heads
    scale = 1.0 / math.sqrt(dk)

    g1 = g1_ref[...]
    be1 = be1_ref[...]

    # ---- K / V for the WHOLE sequence: compute once per batch block (qt == 0),
    #      cache in VMEM scratch, reuse for every query tile of this batch. ----
    @pl.when(qt == 0)
    def _():
        y_seq = _layer_norm(x_ref[0], g1, be1)                        # (S, D)
        k_scr[...] = (_mm(y_seq, wk_ref) + bk_ref[...]).astype(k_scr.dtype)
        v_scr[...] = (_mm(y_seq, wv_ref) + bv_ref[...]).astype(v_scr.dtype)

    # ---- query tile -------------------------------------------------------
    q0 = pl.multiple_of(qt * q_tile, q_tile)
    x_q = x_ref[0, pl.ds(q0, q_tile), :]                              # (TQ, D)
    y_q = _layer_norm(x_q, g1, be1)
    # fold 1/sqrt(dk) into q once (one (TQ,D) multiply instead of H (TQ,S) ones)
    q = (_mm(y_q, wq_ref) + bq_ref[...]) * scale                      # (TQ, D)

    # mask bias hoisted out of the head loop: (1, S) broadcasts over query rows
    mask_bias = jnp.where(mask_ref[0] == 0.0, _NEG_INF, 0.0)          # (1, S)

    k_all = k_scr[...]                                                # (S, D)
    v_all = v_scr[...]                                                # (S, D)

    # ---- multi-head attention (static unroll over heads) ------------------
    # dot_general contracts on dk directly -> no k.T (no XLU lane transpose per
    # head).  Scores / softmax stay in f32 regardless of compute dtype.
    trans_b = (((1,), (1,)), ((), ()))
    head_outs = []
    for h in range(num_heads):
        sl = slice(h * dk, (h + 1) * dk)
        sc = lax.dot_general(q[:, sl].astype(k_all.dtype), k_all[:, sl],
                             trans_b, preferred_element_type=jnp.float32)  # (TQ, S)
        p = _softmax_last(sc + mask_bias)                                   # (TQ, S) f32
        head_outs.append(jnp.dot(p.astype(v_all.dtype), v_all[:, sl],
                                 preferred_element_type=jnp.float32))       # (TQ, dk)
    ctx = jnp.concatenate(head_outs, axis=-1)                               # (TQ, D)

    attn = _mm(ctx, wo_ref) + bo_ref[...]
    x1 = x_q + attn                               # residual (dropout == identity, eval)

    # ---- position-wise feed-forward on the query tile ----------------------
    y2 = _layer_norm(x1, g2_ref[...], be2_ref[...])
    hdd = jnp.maximum(_mm(y2, w1_ref) + b1_ref[...], 0.0)
    ff = _mm(hdd, w2_ref) + b2_ref[...]

    o_ref[0] = (x1 + ff).astype(o_ref.dtype)      # residual (dropout == identity)


# ---------------------------------------------------------------------------
# wrapper
# ---------------------------------------------------------------------------
def encoder_layer(x, mask, params, *, num_heads, q_tile=None,
                  compute_dtype=jnp.float32):
    """x: (B, S, D) f32; mask: (B, 1, S) f32 (1=keep, 0=mask).

    compute_dtype=jnp.bfloat16 casts the six matmul weights/activations to bf16
    (f32 accumulation, f32 scores/softmax/LayerNorm) -- recommended on v6e/v7x.
    """
    B, S, D = x.shape
    d_ff = params["w1"].shape[-1]
    assert D % num_heads == 0

    if q_tile is None:
        q_tile = 128 if (S % 128 == 0) else S     # lane/sublane friendly default
    assert S % q_tile == 0
    n_qt = S // q_tile

    cast = lambda w: w.astype(compute_dtype)
    wq, wk, wv, wo = map(cast, (params["wq"], params["wk"], params["wv"], params["wo"]))
    w1, w2 = cast(params["w1"]), cast(params["w2"])

    # ---- VMEM budget + cost hint -------------------------------------------
    nbytes = lambda a: a.size * a.dtype.itemsize
    weight_bytes = sum(nbytes(a) for a in (wq, wk, wv, wo, w1, w2))
    act_bytes = 4 * (S * D + 2 * q_tile * max(D, d_ff)
                     + num_heads * q_tile * S + q_tile * d_ff)
    scratch_bytes = 2 * S * D * jnp.dtype(compute_dtype).itemsize
    vmem_limit = int(min(64 * 2 ** 20,            # stay within v7x physical VMEM
                         max(32 * 2 ** 20,
                             2 * weight_bytes + 4 * act_bytes + scratch_bytes)))

    flops = 2 * B * S * D * (4 * D + 2 * S + 2 * d_ff)
    transcendentals = B * num_heads * S * S + 4 * B * S
    bytes_accessed = (x.size + mask.size + 2 * B * S * D) * 4 + weight_bytes
    cost = pl.CostEstimate(flops=flops, transcendentals=transcendentals,
                           bytes_accessed=bytes_accessed)

    # ---- specs ---------------------------------------------------------------
    full = lambda shp: pl.BlockSpec(shp, lambda b, t: (0, 0))   # constant index_map:
    weight_specs = [                                            # DMA'd once per revisit
        full((D, D)), full((1, D)),        # wq, bq
        full((D, D)), full((1, D)),        # wk, bk
        full((D, D)), full((1, D)),        # wv, bv
        full((D, D)), full((1, D)),        # wo, bo
        full((D, d_ff)), full((1, d_ff)),  # w1, b1
        full((d_ff, D)), full((1, D)),     # w2, b2
        full((1, D)), full((1, D)),        # ln1 gamma, beta
        full((1, D)), full((1, D)),        # ln2 gamma, beta
    ]

    kernel = functools.partial(encoder_layer_kernel,
                               num_heads=num_heads, q_tile=q_tile)

    return pl.pallas_call(
        kernel,
        out_shape=jax.ShapeDtypeStruct((B, S, D), jnp.float32),
        grid_spec=pltpu.PrefetchScalarGridSpec(
            num_scalar_prefetch=0,
            grid=(B, n_qt),                                  # batch x query-tiles
            in_specs=[
                pl.BlockSpec((1, S, D), lambda b, t: (b, 0, 0)),   # x (full seq)
                pl.BlockSpec((1, 1, S), lambda b, t: (b, 0, 0)),   # mask
            ] + weight_specs,
            out_specs=pl.BlockSpec((1, q_tile, D), lambda b, t: (b, t, 0)),
            scratch_shapes=[
                pltpu.VMEM((S, D), compute_dtype),           # K cache (per sequence)
                pltpu.VMEM((S, D), compute_dtype),           # V cache (per sequence)
            ]),
        compiler_params=pltpu.CompilerParams(
            # query-tile axis is "arbitrary" so the K/V scratch carry is valid;
            # the batch axis is "parallel" for megacore / 2-TC sharding.
            dimension_semantics=("parallel", "arbitrary"),
            vmem_limit_bytes=vmem_limit),
        cost_estimate=cost,
    )(
        x, mask,
        wq, params["bq"], wk, params["bk"],
        wv, params["bv"], wo, params["bo"],
        w1, params["b1"], w2, params["b2"],
        params["g1"], params["be1"], params["g2"], params["be2"],
    )


# ---------------------------------------------------------------------------
# params + pure-JAX reference (for a self-check)
# ---------------------------------------------------------------------------
def make_params(key, d_model, d_ff):
    ks = jax.random.split(key, 8)
    s = 0.05
    return {
        "wq": s * jax.random.normal(ks[0], (d_model, d_model), jnp.float32),
        "wk": s * jax.random.normal(ks[1], (d_model, d_model), jnp.float32),
        "wv": s * jax.random.normal(ks[2], (d_model, d_model), jnp.float32),
        "wo": s * jax.random.normal(ks[3], (d_model, d_model), jnp.float32),
        "w1": s * jax.random.normal(ks[4], (d_model, d_ff), jnp.float32),
        "w2": s * jax.random.normal(ks[5], (d_ff, d_model), jnp.float32),
        "bq": 0.01 * jax.random.normal(ks[6], (1, d_model), jnp.float32),
        "bk": jnp.zeros((1, d_model), jnp.float32),
        "bv": jnp.zeros((1, d_model), jnp.float32),
        "bo": jnp.zeros((1, d_model), jnp.float32),
        "b1": 0.01 * jax.random.normal(ks[7], (1, d_ff), jnp.float32),
        "b2": jnp.zeros((1, d_model), jnp.float32),
        "g1": jnp.ones((1, d_model), jnp.float32),
        "be1": jnp.zeros((1, d_model), jnp.float32),
        "g2": jnp.ones((1, d_model), jnp.float32),
        "be2": jnp.zeros((1, d_model), jnp.float32),
    }


def _reference(x, mask, params, num_heads):
    hi = lax.Precision.HIGHEST

    def ln(z, g, b, eps=_LN_EPS):
        d = z.shape[-1]
        mean = jnp.mean(z, axis=-1, keepdims=True)
        std = jnp.sqrt(jnp.sum((z - mean) ** 2, axis=-1, keepdims=True) / (d - 1))
        return g * (z - mean) / (std + eps) + b

    B, S, D = x.shape
    dk = D // num_heads
    y = ln(x, params["g1"], params["be1"])
    q = jnp.einsum("bsd,de->bse", y, params["wq"], precision=hi) + params["bq"]
    k = jnp.einsum("bsd,de->bse", y, params["wk"], precision=hi) + params["bk"]
    v = jnp.einsum("bsd,de->bse", y, params["wv"], precision=hi) + params["bv"]
    q = q.reshape(B, S, num_heads, dk).transpose(0, 2, 1, 3)
    k = k.reshape(B, S, num_heads, dk).transpose(0, 2, 1, 3)
    v = v.reshape(B, S, num_heads, dk).transpose(0, 2, 1, 3)
    sc = jnp.einsum("bhqd,bhkd->bhqk", q, k, precision=hi) / math.sqrt(dk)
    sc = jnp.where(mask[:, None, :, :] == 0.0, _NEG_INF, sc)
    p = jax.nn.softmax(sc, axis=-1)
    ctx = jnp.einsum("bhqk,bhkd->bhqd", p, v, precision=hi)
    ctx = ctx.transpose(0, 2, 1, 3).reshape(B, S, D)
    x1 = x + jnp.einsum("bsd,de->bse", ctx, params["wo"], precision=hi) + params["bo"]
    y2 = ln(x1, params["g2"], params["be2"])
    h = jax.nn.relu(jnp.einsum("bsd,df->bsf", y2, params["w1"], precision=hi) + params["b1"])
    ff = jnp.einsum("bsf,fd->bsd", h, params["w2"], precision=hi) + params["b2"]
    return x1 + ff


if __name__ == "__main__":
    B, S, D, H, D_FF = 2, 8, 32, 4, 64
    key = jax.random.PRNGKey(0)
    kx, kp = jax.random.split(key)

    x = jax.random.normal(kx, (B, S, D), jnp.float32)
    # mask: first sequence fully valid, second has last 2 positions masked out
    lengths = jnp.array([8, 6], dtype=jnp.int32)
    pos = jnp.arange(S)[None, None, :]                         # (1, 1, S)
    mask = (pos < lengths[:, None, None]).astype(jnp.float32)  # (B, 1, S)

    params = make_params(kp, D, D_FF)

    out = encoder_layer(x, mask, params, num_heads=H)          # f32 compute for fidelity
    out = jax.block_until_ready(out)

    assert out.shape == (B, S, D)
    assert bool(jnp.all(jnp.isfinite(out)))

    ref = _reference(x, mask, params, H)
    err = float(jnp.max(jnp.abs(out - ref)))
    assert err < 5e-2, f"max abs err {err}"

    print("KERNEL_OK")
</pallas_src>

<mosaic_0001>
module attributes {stable_mosaic.version = 11 : i64} {
  func.func @encoder_layer_kernel(%arg0: i32, %arg1: i32, %arg2: memref<1x8x32xf32, #tpu.memory_space<vmem>>, %arg3: memref<1x1x8xf32, #tpu.memory_space<vmem>>, %arg4: memref<32x32xf32, #tpu.memory_space<vmem>>, %arg5: memref<1x32xf32, #tpu.memory_space<vmem>>, %arg6: memref<32x32xf32, #tpu.memory_space<vmem>>, %arg7: memref<1x32xf32, #tpu.memory_space<vmem>>, %arg8: memref<32x32xf32, #tpu.memory_space<vmem>>, %arg9: memref<1x32xf32, #tpu.memory_space<vmem>>, %arg10: memref<32x32xf32, #tpu.memory_space<vmem>>, %arg11: memref<1x32xf32, #tpu.memory_space<vmem>>, %arg12: memref<32x64xf32, #tpu.memory_space<vmem>>, %arg13: memref<1x64xf32, #tpu.memory_space<vmem>>, %arg14: memref<64x32xf32, #tpu.memory_space<vmem>>, %arg15: memref<1x32xf32, #tpu.memory_space<vmem>>, %arg16: memref<1x32xf32, #tpu.memory_space<vmem>>, %arg17: memref<1x32xf32, #tpu.memory_space<vmem>>, %arg18: memref<1x32xf32, #tpu.memory_space<vmem>>, %arg19: memref<1x32xf32, #tpu.memory_space<vmem>>, %arg20: memref<1x8x32xf32, #tpu.memory_space<vmem>>, %arg21: memref<8x32xf32, #tpu.memory_space<vmem>>, %arg22: memref<8x32xf32, #tpu.memory_space<vmem>>) attributes {dimension_semantics = [#tpu.dimension_semantics<parallel>, #tpu.dimension_semantics<arbitrary>], iteration_bounds = array<i64: 2, 1>, scalar_prefetch = 0 : i64, scratch_operands = 2 : i64, tpu.core_type = #tpu.core_type<tc>, window_params = [{transform_indices = @transform_0, window_bounds = array<i64: 1, 8, 32>}, {transform_indices = @transform_1, window_bounds = array<i64: 1, 1, 8>}, {pipeline_mode = #tpu.pipeline_mode<synchronous>, transform_indices = @transform_2, window_bounds = array<i64: 32, 32>}, {pipeline_mode = #tpu.pipeline_mode<synchronous>, transform_indices = @transform_3, window_bounds = array<i64: 1, 32>}, {pipeline_mode = #tpu.pipeline_mode<synchronous>, transform_indices = @transform_4, window_bounds = array<i64: 32, 32>}, {pipeline_mode = #tpu.pipeline_mode<synchronous>, transform_indices = @transform_5, window_bounds = array<i64: 1, 32>}, {pipeline_mode = #tpu.pipeline_mode<synchronous>, transform_indices = @transform_6, window_bounds = array<i64: 32, 32>}, {pipeline_mode = #tpu.pipeline_mode<synchronous>, transform_indices = @transform_7, window_bounds = array<i64: 1, 32>}, {pipeline_mode = #tpu.pipeline_mode<synchronous>, transform_indices = @transform_8, window_bounds = array<i64: 32, 32>}, {pipeline_mode = #tpu.pipeline_mode<synchronous>, transform_indices = @transform_9, window_bounds = array<i64: 1, 32>}, {pipeline_mode = #tpu.pipeline_mode<synchronous>, transform_indices = @transform_10, window_bounds = array<i64: 32, 64>}, {pipeline_mode = #tpu.pipeline_mode<synchronous>, transform_indices = @transform_11, window_bounds = array<i64: 1, 64>}, {pipeline_mode = #tpu.pipeline_mode<synchronous>, transform_indices = @transform_12, window_bounds = array<i64: 64, 32>}, {pipeline_mode = #tpu.pipeline_mode<synchronous>, transform_indices = @transform_13, window_bounds = array<i64: 1, 32>}, {pipeline_mode = #tpu.pipeline_mode<synchronous>, transform_indices = @transform_14, window_bounds = array<i64: 1, 32>}, {pipeline_mode = #tpu.pipeline_mode<synchronous>, transform_indices = @transform_15, window_bounds = array<i64: 1, 32>}, {pipeline_mode = #tpu.pipeline_mode<synchronous>, transform_indices = @transform_16, window_bounds = array<i64: 1, 32>}, {pipeline_mode = #tpu.pipeline_mode<synchronous>, transform_indices = @transform_17, window_bounds = array<i64: 1, 32>}, {transform_indices = @transform_18, window_bounds = array<i64: 1, 8, 32>}]} {
    %c0 = arith.constant 0 : index
    %c0_0 = arith.constant 0 : index
    %0 = vector.load %arg16[%c0, %c0_0] : memref<1x32xf32, #tpu.memory_space<vmem>>, vector<1x32xf32>
    %c0_1 = arith.constant 0 : index
    %c0_2 = arith.constant 0 : index
    %1 = vector.load %arg17[%c0_1, %c0_2] : memref<1x32xf32, #tpu.memory_space<vmem>>, vector<1x32xf32>
    %c0_i32 = arith.constant 0 : i32
    %2 = arith.cmpi eq, %arg1, %c0_i32 : i32
    %3 = arith.extui %2 : i1 to i32
    %c0_i32_3 = arith.constant 0 : i32
    %4 = arith.cmpi ne, %3, %c0_i32_3 : i32
    scf.if %4 {
      %c0_70 = arith.constant 0 : index
      %c0_71 = arith.constant 0 : index
      %c0_72 = arith.constant 0 : index
      %165 = vector.load %arg2[%c0_70, %c0_71, %c0_72] : memref<1x8x32xf32, #tpu.memory_space<vmem>>, vector<1x8x32xf32>
      %166 = vector.shape_cast %165 : vector<1x8x32xf32> to vector<8x32xf32>
      %cst_73 = arith.constant dense<0.000000e+00> : vector<8xf32>
      %167 = vector.multi_reduction <add>, %166, %cst_73 [1] : vector<8x32xf32> to vector<8xf32>
      %168 = vector.shape_cast %167 : vector<8xf32> to vector<8x1xf32>
      %cst_74 = arith.constant 3.200000e+01 : f32
      %169 = vector.broadcast %cst_74 : f32 to vector<8x1xf32>
      %170 = arith.divf %168, %169 : vector<8x1xf32>
      %171 = vector.broadcast %170 : vector<8x1xf32> to vector<8x32xf32>
      %172 = arith.subf %166, %171 : vector<8x32xf32>
      %173 = arith.mulf %172, %172 : vector<8x32xf32>
      %cst_75 = arith.constant dense<0.000000e+00> : vector<8xf32>
      %174 = vector.multi_reduction <add>, %173, %cst_75 [1] : vector<8x32xf32> to vector<8xf32>
      %175 = vector.shape_cast %174 : vector<8xf32> to vector<8x1xf32>
      %cst_76 = arith.constant 0.0322580636 : f32
      %176 = vector.broadcast %cst_76 : f32 to vector<8x1xf32>
      %177 = arith.mulf %175, %176 : vector<8x1xf32>
      %178 = math.sqrt %177 : vector<8x1xf32>
      %cst_77 = arith.constant 9.99999997E-7 : f32
      %179 = vector.broadcast %cst_77 : f32 to vector<8x1xf32>
      %180 = arith.addf %178, %179 : vector<8x1xf32>
      %181 = tpu.reciprocal %180 {approx = true} : vector<8x1xf32> -> vector<8x1xf32>
      %182 = vector.broadcast %170 : vector<8x1xf32> to vector<8x32xf32>
      %183 = arith.subf %166, %182 : vector<8x32xf32>
      %184 = vector.broadcast %0 : vector<1x32xf32> to vector<8x32xf32>
      %185 = arith.mulf %184, %183 : vector<8x32xf32>
      %186 = vector.broadcast %181 : vector<8x1xf32> to vector<8x32xf32>
      %187 = arith.mulf %185, %186 : vector<8x32xf32>
      %188 = vector.broadcast %1 : vector<1x32xf32> to vector<8x32xf32>
      %189 = arith.addf %187, %188 : vector<8x32xf32>
      %c0_78 = arith.constant 0 : index
      %c0_79 = arith.constant 0 : index
      %190 = vector.load %arg6[%c0_78, %c0_79] : memref<32x32xf32, #tpu.memory_space<vmem>>, vector<32x32xf32>
      %cst_80 = arith.constant dense<0.000000e+00> : vector<8x32xf32>
      %191 = tpu.matmul %189, %190, %cst_80 {dimension_numbers = #tpu.dot_dimension_numbers<[1], [0], [0], [1], [0, 0, 1, 1], [], []>} : vector<8x32xf32>, vector<32x32xf32>, vector<8x32xf32> -> vector<8x32xf32>
      %c0_81 = arith.constant 0 : index
      %c0_82 = arith.constant 0 : index
      %192 = vector.load %arg7[%c0_81, %c0_82] : memref<1x32xf32, #tpu.memory_space<vmem>>, vector<1x32xf32>
      %193 = vector.broadcast %192 : vector<1x32xf32> to vector<8x32xf32>
      %194 = arith.addf %191, %193 : vector<8x32xf32>
      %c0_83 = arith.constant 0 : index
      %c0_84 = arith.constant 0 : index
      %195 = vector.load %arg21[%c0_83, %c0_84] : memref<8x32xf32, #tpu.memory_space<vmem>>, vector<8x32xf32>
      tpu.vector_store %arg21[%c0_83, %c0_84], %194 {strides = array<i32>} : memref<8x32xf32, #tpu.memory_space<vmem>>, vector<8x32xf32>,
      %c0_85 = arith.constant 0 : index
      %c0_86 = arith.constant 0 : index
      %196 = vector.load %arg8[%c0_85, %c0_86] : memref<32x32xf32, #tpu.memory_space<vmem>>, vector<32x32xf32>
      %cst_87 = arith.constant dense<0.000000e+00> : vector<8x32xf32>
      %197 = tpu.matmul %189, %196, %cst_87 {dimension_numbers = #tpu.dot_dimension_numbers<[1], [0], [0], [1], [0, 0, 1, 1], [], []>} : vector<8x32xf32>, vector<32x32xf32>, vector<8x32xf32> -> vector<8x32xf32>
      %c0_88 = arith.constant 0 : index
      %c0_89 = arith.constant 0 : index
      %198 = vector.load %arg9[%c0_88, %c0_89] : memref<1x32xf32, #tpu.memory_space<vmem>>, vector<1x32xf32>
      %199 = vector.broadcast %198 : vector<1x32xf32> to vector<8x32xf32>
      %200 = arith.addf %197, %199 : vector<8x32xf32>
      %c0_90 = arith.constant 0 : index
      %c0_91 = arith.constant 0 : index
      %201 = vector.load %arg22[%c0_90, %c0_91] : memref<8x32xf32, #tpu.memory_space<vmem>>, vector<8x32xf32>
      tpu.vector_store %arg22[%c0_90, %c0_91], %200 {strides = array<i32>} : memref<8x32xf32, #tpu.memory_space<vmem>>, vector<8x32xf32>,
    } else {
    }
    %c8_i32 = arith.constant 8 : i32
    %5 = arith.muli %arg1, %c8_i32 : i32
    %6 = tpu.assume_multiple %5, 8 : i32
    %c0_4 = arith.constant 0 : index
    %7 = arith.index_cast %6 : i32 to index
    %c0_5 = arith.constant 0 : index
    %8 = vector.load %arg2[%c0_4, %7, %c0_5] : memref<1x8x32xf32, #tpu.memory_space<vmem>>, vector<1x8x32xf32>
    %9 = vector.shape_cast %8 : vector<1x8x32xf32> to vector<8x32xf32>
    %cst = arith.constant dense<0.000000e+00> : vector<8xf32>
    %10 = vector.multi_reduction <add>, %9, %cst [1] : vector<8x32xf32> to vector<8xf32>
    %11 = vector.shape_cast %10 : vector<8xf32> to vector<8x1xf32>
    %cst_6 = arith.constant 3.200000e+01 : f32
    %12 = vector.broadcast %cst_6 : f32 to vector<8x1xf32>
    %13 = arith.divf %11, %12 : vector<8x1xf32>
    %14 = vector.broadcast %13 : vector<8x1xf32> to vector<8x32xf32>
    %15 = arith.subf %9, %14 : vector<8x32xf32>
    %16 = arith.mulf %15, %15 : vector<8x32xf32>
    %cst_7 = arith.constant dense<0.000000e+00> : vector<8xf32>
    %17 = vector.multi_reduction <add>, %16, %cst_7 [1] : vector<8x32xf32> to vector<8xf32>
    %18 = vector.shape_cast %17 : vector<8xf32> to vector<8x1xf32>
    %cst_8 = arith.constant 0.0322580636 : f32
    %19 = vector.broadcast %cst_8 : f32 to vector<8x1xf32>
    %20 = arith.mulf %18, %19 : vector<8x1xf32>
    %21 = math.sqrt %20 : vector<8x1xf32>
    %cst_9 = arith.constant 9.99999997E-7 : f32
    %22 = vector.broadcast %cst_9 : f32 to vector<8x1xf32>
    %23 = arith.addf %21, %22 : vector<8x1xf32>
    %24 = tpu.reciprocal %23 {approx = true} : vector<8x1xf32> -> vector<8x1xf32>
    %25 = vector.broadcast %13 : vector<8x1xf32> to vector<8x32xf32>
    %26 = arith.subf %9, %25 : vector<8x32xf32>
    %27 = vector.broadcast %0 : vector<1x32xf32> to vector<8x32xf32>
    %28 = arith.mulf %27, %26 : vector<8x32xf32>
    %29 = vector.broadcast %24 : vector<8x1xf32> to vector<8x32xf32>
    %30 = arith.mulf %28, %29 : vector<8x32xf32>
    %31 = vector.broadcast %1 : vector<1x32xf32> to vector<8x32xf32>
    %32 = arith.addf %30, %31 : vector<8x32xf32>
    %c0_10 = arith.constant 0 : index
    %c0_11 = arith.constant 0 : index
    %33 = vector.load %arg4[%c0_10, %c0_11] : memref<32x32xf32, #tpu.memory_space<vmem>>, vector<32x32xf32>
    %cst_12 = arith.constant dense<0.000000e+00> : vector<8x32xf32>
    %34 = tpu.matmul %32, %33, %cst_12 {dimension_numbers = #tpu.dot_dimension_numbers<[1], [0], [0], [1], [0, 0, 1, 1], [], []>} : vector<8x32xf32>, vector<32x32xf32>, vector<8x32xf32> -> vector<8x32xf32>
    %c0_13 = arith.constant 0 : index
    %c0_14 = arith.constant 0 : index
    %35 = vector.load %arg5[%c0_13, %c0_14] : memref<1x32xf32, #tpu.memory_space<vmem>>, vector<1x32xf32>
    %36 = vector.broadcast %35 : vector<1x32xf32> to vector<8x32xf32>
    %37 = arith.addf %34, %36 : vector<8x32xf32>
    %cst_15 = arith.constant 0.353553385 : f32
    %38 = vector.broadcast %cst_15 : f32 to vector<8x32xf32>
    %39 = arith.mulf %37, %38 : vector<8x32xf32>
    %c0_16 = arith.constant 0 : index
    %c0_17 = arith.constant 0 : index
    %c0_18 = arith.constant 0 : index
    %40 = vector.load %arg3[%c0_16, %c0_17, %c0_18] : memref<1x1x8xf32, #tpu.memory_space<vmem>>, vector<1x1x8xf32>
    %41 = vector.shape_cast %40 : vector<1x1x8xf32> to vector<1x8xf32>
    %cst_19 = arith.constant 0.000000e+00 : f32
    %42 = vector.broadcast %cst_19 : f32 to vector<1x8xf32>
    %43 = arith.cmpf oeq, %41, %42 : vector<1x8xf32>
    %cst_20 = arith.constant -1.000000e+09 : f32
    %cst_21 = arith.constant 0.000000e+00 : f32
    %44 = vector.broadcast %cst_20 : f32 to vector<1x8xf32>
    %45 = vector.broadcast %cst_21 : f32 to vector<1x8xf32>
    %46 = arith.select %43, %44, %45 : vector<1x8xi1>, vector<1x8xf32>
    %c0_22 = arith.constant 0 : index
    %c0_23 = arith.constant 0 : index
    %47 = vector.load %arg21[%c0_22, %c0_23] : memref<8x32xf32, #tpu.memory_space<vmem>>, vector<8x32xf32>
    %c0_24 = arith.constant 0 : index
    %c0_25 = arith.constant 0 : index
    %48 = vector.load %arg22[%c0_24, %c0_25] : memref<8x32xf32, #tpu.memory_space<vmem>>, vector<8x32xf32>
    %49 = vector.extract_strided_slice %39 {offsets = [0, 0], sizes = [8, 8], strides = [1, 1]} : vector<8x32xf32> to vector<8x8xf32>
    %50 = vector.extract_strided_slice %47 {offsets = [0, 0], sizes = [8, 8], strides = [1, 1]} : vector<8x32xf32> to vector<8x8xf32>
    %cst_26 = arith.constant dense<0.000000e+00> : vector<8x8xf32>
    %51 = tpu.matmul %49, %50, %cst_26 {dimension_numbers = #tpu.dot_dimension_numbers<[1], [1], [0], [0], [0, 0, 1, 0], [], []>} : vector<8x8xf32>, vector<8x8xf32>, vector<8x8xf32> -> vector<8x8xf32>
    %52 = vector.broadcast %46 : vector<1x8xf32> to vector<8x8xf32>
    %53 = arith.addf %51, %52 : vector<8x8xf32>
    %cst_27 = arith.constant dense<0xFF800000> : vector<8xf32>
    %54 = vector.multi_reduction <maximumf>, %53, %cst_27 [1] : vector<8x8xf32> to vector<8xf32>
    %55 = vector.shape_cast %54 : vector<8xf32> to vector<8x1xf32>
    %56 = vector.broadcast %55 : vector<8x1xf32> to vector<8x8xf32>
    %57 = arith.subf %53, %56 : vector<8x8xf32>
    %58 = math.exp %57 : vector<8x8xf32>
    %cst_28 = arith.constant dense<0.000000e+00> : vector<8xf32>
    %59 = vector.multi_reduction <add>, %58, %cst_28 [1] : vector<8x8xf32> to vector<8xf32>
    %60 = vector.shape_cast %59 : vector<8xf32> to vector<8x1xf32>
    %61 = tpu.reciprocal %60 {approx = true} : vector<8x1xf32> -> vector<8x1xf32>
    %62 = vector.broadcast %61 : vector<8x1xf32> to vector<8x8xf32>
    %63 = arith.mulf %58, %62 : vector<8x8xf32>
    %64 = vector.extract_strided_slice %48 {offsets = [0, 0], sizes = [8, 8], strides = [1, 1]} : vector<8x32xf32> to vector<8x8xf32>
    %cst_29 = arith.constant dense<0.000000e+00> : vector<8x8xf32>
    %65 = tpu.matmul %63, %64, %cst_29 {dimension_numbers = #tpu.dot_dimension_numbers<[1], [0], [0], [1], [0, 0, 1, 1], [], []>} : vector<8x8xf32>, vector<8x8xf32>, vector<8x8xf32> -> vector<8x8xf32>
    %66 = vector.extract_strided_slice %39 {offsets = [0, 8], sizes = [8, 8], strides = [1, 1]} : vector<8x32xf32> to vector<8x8xf32>
    %67 = vector.extract_strided_slice %47 {offsets = [0, 8], sizes = [8, 8], strides = [1, 1]} : vector<8x32xf32> to vector<8x8xf32>
    %cst_30 = arith.constant dense<0.000000e+00> : vector<8x8xf32>
    %68 = tpu.matmul %66, %67, %cst_30 {dimension_numbers = #tpu.dot_dimension_numbers<[1], [1], [0], [0], [0, 0, 1, 0], [], []>} : vector<8x8xf32>, vector<8x8xf32>, vector<8x8xf32> -> vector<8x8xf32>
    %69 = vector.broadcast %46 : vector<1x8xf32> to vector<8x8xf32>
    %70 = arith.addf %68, %69 : vector<8x8xf32>
    %cst_31 = arith.constant dense<0xFF800000> : vector<8xf32>
    %71 = vector.multi_reduction <maximumf>, %70, %cst_31 [1] : vector<8x8xf32> to vector<8xf32>
    %72 = vector.shape_cast %71 : vector<8xf32> to vector<8x1xf32>
    %73 = vector.broadcast %72 : vector<8x1xf32> to vector<8x8xf32>
    %74 = arith.subf %70, %73 : vector<8x8xf32>
    %75 = math.exp %74 : vector<8x8xf32>
    %cst_32 = arith.constant dense<0.000000e+00> : vector<8xf32>
    %76 = vector.multi_reduction <add>, %75, %cst_32 [1] : vector<8x8xf32> to vector<8xf32>
    %77 = vector.shape_cast %76 : vector<8xf32> to vector<8x1xf32>
    %78 = tpu.reciprocal %77 {approx = true} : vector<8x1xf32> -> vector<8x1xf32>
    %79 = vector.broadcast %78 : vector<8x1xf32> to vector<8x8xf32>
    %80 = arith.mulf %75, %79 : vector<8x8xf32>
    %81 = vector.extract_strided_slice %48 {offsets = [0, 8], sizes = [8, 8], strides = [1, 1]} : vector<8x32xf32> to vector<8x8xf32>
    %cst_33 = arith.constant dense<0.000000e+00> : vector<8x8xf32>
    %82 = tpu.matmul %80, %81, %cst_33 {dimension_numbers = #tpu.dot_dimension_numbers<[1], [0], [0], [1], [0, 0, 1, 1], [], []>} : vector<8x8xf32>, vector<8x8xf32>, vector<8x8xf32> -> vector<8x8xf32>
    %83 = vector.extract_strided_slice %39 {offsets = [0, 16], sizes = [8, 8], strides = [1, 1]} : vector<8x32xf32> to vector<8x8xf32>
    %84 = vector.extract_strided_slice %47 {offsets = [0, 16], sizes = [8, 8], strides = [1, 1]} : vector<8x32xf32> to vector<8x8xf32>
    %cst_34 = arith.constant dense<0.000000e+00> : vector<8x8xf32>
    %85 = tpu.matmul %83, %84, %cst_34 {dimension_numbers = #tpu.dot_dimension_numbers<[1], [1], [0], [0], [0, 0, 1, 0], [], []>} : vector<8x8xf32>, vector<8x8xf32>, vector<8x8xf32> -> vector<8x8xf32>
    %86 = vector.broadcast %46 : vector<1x8xf32> to vector<8x8xf32>
    %87 = arith.addf %85, %86 : vector<8x8xf32>
    %cst_35 = arith.constant dense<0xFF800000> : vector<8xf32>
    %88 = vector.multi_reduction <maximumf>, %87, %cst_35 [1] : vector<8x8xf32> to vector<8xf32>
    %89 = vector.shape_cast %88 : vector<8xf32> to vector<8x1xf32>
    %90 = vector.broadcast %89 : vector<8x1xf32> to vector<8x8xf32>
    %91 = arith.subf %87, %90 : vector<8x8xf32>
    %92 = math.exp %91 : vector<8x8xf32>
    %cst_36 = arith.constant dense<0.000000e+00> : vector<8xf32>
    %93 = vector.multi_reduction <add>, %92, %cst_36 [1] : vector<8x8xf32> to vector<8xf32>
    %94 = vector.shape_cast %93 : vector<8xf32> to vector<8x1xf32>
    %95 = tpu.reciprocal %94 {approx = true} : vector<8x1xf32> -> vector<8x1xf32>
    %96 = vector.broadcast %95 : vector<8x1xf32> to vector<8x8xf32>
    %97 = arith.mulf %92, %96 : vector<8x8xf32>
    %98 = vector.extract_strided_slice %48 {offsets = [0, 16], sizes = [8, 8], strides = [1, 1]} : vector<8x32xf32> to vector<8x8xf32>
    %cst_37 = arith.constant dense<0.000000e+00> : vector<8x8xf32>
    %99 = tpu.matmul %97, %98, %cst_37 {dimension_numbers = #tpu.dot_dimension_numbers<[1], [0], [0], [1], [0, 0, 1, 1], [], []>} : vector<8x8xf32>, vector<8x8xf32>, vector<8x8xf32> -> vector<8x8xf32>
    %100 = vector.extract_strided_slice %39 {offsets = [0, 24], sizes = [8, 8], strides = [1, 1]} : vector<8x32xf32> to vector<8x8xf32>
    %101 = vector.extract_strided_slice %47 {offsets = [0, 24], sizes = [8, 8], strides = [1, 1]} : vector<8x32xf32> to vector<8x8xf32>
    %cst_38 = arith.constant dense<0.000000e+00> : vector<8x8xf32>
    %102 = tpu.matmul %100, %101, %cst_38 {dimension_numbers = #tpu.dot_dimension_numbers<[1], [1], [0], [0], [0, 0, 1, 0], [], []>} : vector<8x8xf32>, vector<8x8xf32>, vector<8x8xf32> -> vector<8x8xf32>
    %103 = vector.broadcast %46 : vector<1x8xf32> to vector<8x8xf32>
    %104 = arith.addf %102, %103 : vector<8x8xf32>
    %cst_39 = arith.constant dense<0xFF800000> : vector<8xf32>
    %105 = vector.multi_reduction <maximumf>, %104, %cst_39 [1] : vector<8x8xf32> to vector<8xf32>
    %106 = vector.shape_cast %105 : vector<8xf32> to vector<8x1xf32>
    %107 = vector.broadcast %106 : vector<8x1xf32> to vector<8x8xf32>
    %108 = arith.subf %104, %107 : vector<8x8xf32>
    %109 = math.exp %108 : vector<8x8xf32>
    %cst_40 = arith.constant dense<0.000000e+00> : vector<8xf32>
    %110 = vector.multi_reduction <add>, %109, %cst_40 [1] : vector<8x8xf32> to vector<8xf32>
    %111 = vector.shape_cast %110 : vector<8xf32> to vector<8x1xf32>
    %112 = tpu.reciprocal %111 {approx = true} : vector<8x1xf32> -> vector<8x1xf32>
    %113 = vector.broadcast %112 : vector<8x1xf32> to vector<8x8xf32>
    %114 = arith.mulf %109, %113 : vector<8x8xf32>
    %115 = vector.extract_strided_slice %48 {offsets = [0, 24], sizes = [8, 8], strides = [1, 1]} : vector<8x32xf32> to vector<8x8xf32>
    %cst_41 = arith.constant dense<0.000000e+00> : vector<8x8xf32>
    %116 = tpu.matmul %114, %115, %cst_41 {dimension_numbers = #tpu.dot_dimension_numbers<[1], [0], [0], [1], [0, 0, 1, 1], [], []>} : vector<8x8xf32>, vector<8x8xf32>, vector<8x8xf32> -> vector<8x8xf32>
    %117 = tpu.concatenate %65, %82, %99, %116 in 1 : vector<8x8xf32>, vector<8x8xf32>, vector<8x8xf32>, vector<8x8xf32> -> vector<8x32xf32>
    %c0_42 = arith.constant 0 : index
    %c0_43 = arith.constant 0 : index
    %118 = vector.load %arg10[%c0_42, %c0_43] : memref<32x32xf32, #tpu.memory_space<vmem>>, vector<32x32xf32>
    %cst_44 = arith.constant dense<0.000000e+00> : vector<8x32xf32>
    %119 = tpu.matmul %117, %118, %cst_44 {dimension_numbers = #tpu.dot_dimension_numbers<[1], [0], [0], [1], [0, 0, 1, 1], [], []>} : vector<8x32xf32>, vector<32x32xf32>, vector<8x32xf32> -> vector<8x32xf32>
    %c0_45 = arith.constant 0 : index
    %c0_46 = arith.constant 0 : index
    %120 = vector.load %arg11[%c0_45, %c0_46] : memref<1x32xf32, #tpu.memory_space<vmem>>, vector<1x32xf32>
    %121 = vector.broadcast %120 : vector<1x32xf32> to vector<8x32xf32>
    %122 = arith.addf %119, %121 : vector<8x32xf32>
    %123 = arith.addf %9, %122 : vector<8x32xf32>
    %c0_47 = arith.constant 0 : index
    %c0_48 = arith.constant 0 : index
    %124 = vector.load %arg18[%c0_47, %c0_48] : memref<1x32xf32, #tpu.memory_space<vmem>>, vector<1x32xf32>
    %c0_49 = arith.constant 0 : index
    %c0_50 = arith.constant 0 : index
    %125 = vector.load %arg19[%c0_49, %c0_50] : memref<1x32xf32, #tpu.memory_space<vmem>>, vector<1x32xf32>
    %cst_51 = arith.constant dense<0.000000e+00> : vector<8xf32>
    %126 = vector.multi_reduction <add>, %123, %cst_51 [1] : vector<8x32xf32> to vector<8xf32>
    %127 = vector.shape_cast %126 : vector<8xf32> to vector<8x1xf32>
    %cst_52 = arith.constant 3.200000e+01 : f32
    %128 = vector.broadcast %cst_52 : f32 to vector<8x1xf32>
    %129 = arith.divf %127, %128 : vector<8x1xf32>
    %130 = vector.broadcast %129 : vector<8x1xf32> to vector<8x32xf32>
    %131 = arith.subf %123, %130 : vector<8x32xf32>
    %132 = arith.mulf %131, %131 : vector<8x32xf32>
    %cst_53 = arith.constant dense<0.000000e+00> : vector<8xf32>
    %133 = vector.multi_reduction <add>, %132, %cst_53 [1] : vector<8x32xf32> to vector<8xf32>
    %134 = vector.shape_cast %133 : vector<8xf32> to vector<8x1xf32>
    %cst_54 = arith.constant 0.0322580636 : f32
    %135 = vector.broadcast %cst_54 : f32 to vector<8x1xf32>
    %136 = arith.mulf %134, %135 : vector<8x1xf32>
    %137 = math.sqrt %136 : vector<8x1xf32>
    %cst_55 = arith.constant 9.99999997E-7 : f32
    %138 = vector.broadcast %cst_55 : f32 to vector<8x1xf32>
    %139 = arith.addf %137, %138 : vector<8x1xf32>
    %140 = tpu.reciprocal %139 {approx = true} : vector<8x1xf32> -> vector<8x1xf32>
    %141 = vector.broadcast %129 : vector<8x1xf32> to vector<8x32xf32>
    %142 = arith.subf %123, %141 : vector<8x32xf32>
    %143 = vector.broadcast %124 : vector<1x32xf32> to vector<8x32xf32>
    %144 = arith.mulf %143, %142 : vector<8x32xf32>
    %145 = vector.broadcast %140 : vector<8x1xf32> to vector<8x32xf32>
    %146 = arith.mulf %144, %145 : vector<8x32xf32>
    %147 = vector.broadcast %125 : vector<1x32xf32> to vector<8x32xf32>
    %148 = arith.addf %146, %147 : vector<8x32xf32>
    %c0_56 = arith.constant 0 : index
    %c0_57 = arith.constant 0 : index
    %149 = vector.load %arg12[%c0_56, %c0_57] : memref<32x64xf32, #tpu.memory_space<vmem>>, vector<32x64xf32>
    %cst_58 = arith.constant dense<0.000000e+00> : vector<8x64xf32>
    %150 = tpu.matmul %148, %149, %cst_58 {dimension_numbers = #tpu.dot_dimension_numbers<[1], [0], [0], [1], [0, 0, 1, 1], [], []>} : vector<8x32xf32>, vector<32x64xf32>, vector<8x64xf32> -> vector<8x64xf32>
    %c0_59 = arith.constant 0 : index
    %c0_60 = arith.constant 0 : index
    %151 = vector.load %arg13[%c0_59, %c0_60] : memref<1x64xf32, #tpu.memory_space<vmem>>, vector<1x64xf32>
    %152 = vector.broadcast %151 : vector<1x64xf32> to vector<8x64xf32>
    %153 = arith.addf %150, %152 : vector<8x64xf32>
    %cst_61 = arith.constant 0.000000e+00 : f32
    %154 = vector.broadcast %cst_61 : f32 to vector<8x64xf32>
    %155 = arith.maximumf %153, %154 : vector<8x64xf32>
    %c0_62 = arith.constant 0 : index
    %c0_63 = arith.constant 0 : index
    %156 = vector.load %arg14[%c0_62, %c0_63] : memref<64x32xf32, #tpu.memory_space<vmem>>, vector<64x32xf32>
    %cst_64 = arith.constant dense<0.000000e+00> : vector<8x32xf32>
    %157 = tpu.matmul %155, %156, %cst_64 {dimension_numbers = #tpu.dot_dimension_numbers<[1], [0], [0], [1], [0, 0, 1, 1], [], []>} : vector<8x64xf32>, vector<64x32xf32>, vector<8x32xf32> -> vector<8x32xf32>
    %c0_65 = arith.constant 0 : index
    %c0_66 = arith.constant 0 : index
    %158 = vector.load %arg15[%c0_65, %c0_66] : memref<1x32xf32, #tpu.memory_space<vmem>>, vector<1x32xf32>
    %159 = vector.broadcast %158 : vector<1x32xf32> to vector<8x32xf32>
    %160 = arith.addf %157, %159 : vector<8x32xf32>
    %161 = arith.addf %123, %160 : vector<8x32xf32>
    %c0_67 = arith.constant 0 : index
    %c0_68 = arith.constant 0 : index
    %c0_69 = arith.constant 0 : index
    %162 = vector.load %arg20[%c0_67, %c0_68, %c0_69] : memref<1x8x32xf32, #tpu.memory_space<vmem>>, vector<1x8x32xf32>
    %163 = vector.shape_cast %162 : vector<1x8x32xf32> to vector<8x32xf32>
    %164 = vector.shape_cast %161 : vector<8x32xf32> to vector<1x8x32xf32>
    tpu.vector_store %arg20[%c0_67, %c0_68, %c0_69], %164 {strides = array<i32>} : memref<1x8x32xf32, #tpu.memory_space<vmem>>, vector<1x8x32xf32>,
    return
  }
  func.func @transform_0(%arg0: i32, %arg1: i32) -> (i32, i32, i32) {
    %c0_i32 = arith.constant 0 : i32
    %c0_i32_0 = arith.constant 0 : i32
    %c0_i32_1 = arith.constant 0 : i32
    return %arg0, %c0_i32, %c0_i32_0 : i32, i32, i32
  }
  func.func @transform_1(%arg0: i32, %arg1: i32) -> (i32, i32, i32) {
    %c0_i32 = arith.constant 0 : i32
    %c0_i32_0 = arith.constant 0 : i32
    %c0_i32_1 = arith.constant 0 : i32
    return %arg0, %c0_i32, %c0_i32_0 : i32, i32, i32
  }
  func.func @transform_2(%arg0: i32, %arg1: i32) -> (i32, i32) {
    %c0_i32 = arith.constant 0 : i32
    %c0_i32_0 = arith.constant 0 : i32
    %c0_i32_1 = arith.constant 0 : i32
    return %c0_i32, %c0_i32_0 : i32, i32
  }
  func.func @transform_3(%arg0: i32, %arg1: i32) -> (i32, i32) {
    %c0_i32 = arith.constant 0 : i32
    %c0_i32_0 = arith.constant 0 : i32
    %c0_i32_1 = arith.constant 0 : i32
    return %c0_i32, %c0_i32_0 : i32, i32
  }
  func.func @transform_4(%arg0: i32, %arg1: i32) -> (i32, i32) {
    %c0_i32 = arith.constant 0 : i32
    %c0_i32_0 = arith.constant 0 : i32
    %c0_i32_1 = arith.constant 0 : i32
    return %c0_i32, %c0_i32_0 : i32, i32
  }
  func.func @transform_5(%arg0: i32, %arg1: i32) -> (i32, i32) {
    %c0_i32 = arith.constant 0 : i32
    %c0_i32_0 = arith.constant 0 : i32
    %c0_i32_1 = arith.constant 0 : i32
    return %c0_i32, %c0_i32_0 : i32, i32
  }
  func.func @transform_6(%arg0: i32, %arg1: i32) -> (i32, i32) {
    %c0_i32 = arith.constant 0 : i32
    %c0_i32_0 = arith.constant 0 : i32
    %c0_i32_1 = arith.constant 0 : i32
    return %c0_i32, %c0_i32_0 : i32, i32
  }
  func.func @transform_7(%arg0: i32, %arg1: i32) -> (i32, i32) {
    %c0_i32 = arith.constant 0 : i32
    %c0_i32_0 = arith.constant 0 : i32
    %c0_i32_1 = arith.constant 0 : i32
    return %c0_i32, %c0_i32_0 : i32, i32
  }
  func.func @transform_8(%arg0: i32, %arg1: i32) -> (i32, i32) {
    %c0_i32 = arith.constant 0 : i32
    %c0_i32_0 = arith.constant 0 : i32
    %c0_i32_1 = arith.constant 0 : i32
    return %c0_i32, %c0_i32_0 : i32, i32
  }
  func.func @transform_9(%arg0: i32, %arg1: i32) -> (i32, i32) {
    %c0_i32 = arith.constant 0 : i32
    %c0_i32_0 = arith.constant 0 : i32
    %c0_i32_1 = arith.constant 0 : i32
    return %c0_i32, %c0_i32_0 : i32, i32
  }
  func.func @transform_10(%arg0: i32, %arg1: i32) -> (i32, i32) {
    %c0_i32 = arith.constant 0 : i32
    %c0_i32_0 = arith.constant 0 : i32
    %c0_i32_1 = arith.constant 0 : i32
    return %c0_i32, %c0_i32_0 : i32, i32
  }
  func.func @transform_11(%arg0: i32, %arg1: i32) -> (i32, i32) {
    %c0_i32 = arith.constant 0 : i32
    %c0_i32_0 = arith.constant 0 : i32
    %c0_i32_1 = arith.constant 0 : i32
    return %c0_i32, %c0_i32_0 : i32, i32
  }
  func.func @transform_12(%arg0: i32, %arg1: i32) -> (i32, i32) {
    %c0_i32 = arith.constant 0 : i32
    %c0_i32_0 = arith.constant 0 : i32
    %c0_i32_1 = arith.constant 0 : i32
    return %c0_i32, %c0_i32_0 : i32, i32
  }
  func.func @transform_13(%arg0: i32, %arg1: i32) -> (i32, i32) {
    %c0_i32 = arith.constant 0 : i32
    %c0_i32_0 = arith.constant 0 : i32
    %c0_i32_1 = arith.constant 0 : i32
    return %c0_i32, %c0_i32_0 : i32, i32
  }
  func.func @transform_14(%arg0: i32, %arg1: i32) -> (i32, i32) {
    %c0_i32 = arith.constant 0 : i32
    %c0_i32_0 = arith.constant 0 : i32
    %c0_i32_1 = arith.constant 0 : i32
    return %c0_i32, %c0_i32_0 : i32, i32
  }
  func.func @transform_15(%arg0: i32, %arg1: i32) -> (i32, i32) {
    %c0_i32 = arith.constant 0 : i32
    %c0_i32_0 = arith.constant 0 : i32
    %c0_i32_1 = arith.constant 0 : i32
    return %c0_i32, %c0_i32_0 : i32, i32
  }
  func.func @transform_16(%arg0: i32, %arg1: i32) -> (i32, i32) {
    %c0_i32 = arith.constant 0 : i32
    %c0_i32_0 = arith.constant 0 : i32
    %c0_i32_1 = arith.constant 0 : i32
    return %c0_i32, %c0_i32_0 : i32, i32
  }
  func.func @transform_17(%arg0: i32, %arg1: i32) -> (i32, i32) {
    %c0_i32 = arith.constant 0 : i32
    %c0_i32_0 = arith.constant 0 : i32
    %c0_i32_1 = arith.constant 0 : i32
    return %c0_i32, %c0_i32_0 : i32, i32
  }
  func.func @transform_18(%arg0: i32, %arg1: i32) -> (i32, i32, i32) {
    %c0_i32 = arith.constant 0 : i32
    %c0_i32_0 = arith.constant 0 : i32
    return %arg0, %arg1, %c0_i32 : i32, i32, i32
  }
}

</mosaic_0001>

<bundles_post_ra>
// kernel: tpu_custom_call.1
= control target key start
LH: loop header
LB: loop body
LE: loop exit
PB: predicated region body
PF: predicated region fallthrough
CT: control target
= control target key end

     0   :  { %s3196_s0 = inlined_call_operand.hbm [shape: f32[2,8,32], index: 0, kind: input, shape index: {}]   ;;  %s3197_s1 = inlined_call_operand.hbm [shape: f32[2,1,8], index: 1, kind: input, shape index: {}]   ;;  %s3198_s2 = inlined_call_operand.vmem [shape: f32[32,32], index: 2, kind: input, shape index: {}]   ;;  %s3199_s3 = inlined_call_operand.vmem [shape: f32[1,32], index: 3, kind: input, shape index: {}]   ;;  %s3200_s4 = inlined_call_operand.vmem [shape: f32[32,32], index: 4, kind: input, shape index: {}]   ;;  %s3201_s5 = inlined_call_operand.vmem [shape: f32[1,32], index: 5, kind: input, shape index: {}]   ;;  %s3202_s6 = inlined_call_operand.vmem [shape: f32[32,32], index: 6, kind: input, shape index: {}]   ;;  %s3203_s7 = inlined_call_operand.vmem [shape: f32[1,32], index: 7, kind: input, shape index: {}]   ;;  %s3204_s8 = inlined_call_operand.hbm [shape: f32[32,32], index: 8, kind: input, shape index: {}]   ;;  %s3205_s9 = inlined_call_operand.vmem [shape: f32[1,32], index: 9, kind: input, shape index: {}]   ;;  %s3206_s10 = inlined_call_operand.hbm [shape: f32[32,64], index: 10, kind: input, shape index: {}]   ;;  %s3207_s11 = inlined_call_operand.vmem [shape: f32[1,64], index: 11, kind: input, shape index: {}]   ;;  %s3208_s12 = inlined_call_operand.vmem [shape: f32[64,32], index: 12, kind: input, shape index: {}]   ;;  %s3209_s13 = inlined_call_operand.vmem [shape: f32[1,32], index: 13, kind: input, shape index: {}]   ;;  %s3210_s14 = inlined_call_operand.vmem [shape: f32[1,32], index: 14, kind: input, shape index: {}]   ;;  %s3211_s15 = inlined_call_operand.vmem [shape: f32[1,32], index: 15, kind: input, shape index: {}]   ;;  %s3212_s16 = inlined_call_operand.vmem [shape: f32[1,32], index: 16, kind: input, shape index: {}]   ;;  %s3213_s17 = inlined_call_operand.vmem [shape: f32[1,32], index: 17, kind: input, shape index: {}]   ;;  %s3214_s18 = inlined_call_operand.hbm [shape: f32[2,8,32], index: 18, kind: output, shape index: {}]  }
   0x1   :  { %3227 = sst [smem:[#allocation26_spill]] %s3196_s0 }
   0x2   :  { %3228 = sst [smem:[#allocation27_spill]] %s3197_s1 }
   0x3   :  { %3229 = sst [smem:[#allocation28_spill]] %s3198_s2 }
   0x4   :  { %3230 = sst [smem:[#allocation29_spill]] %s3204_s8 }
   0x5   :  { %3231 = sst [smem:[#allocation30_spill]] %s3206_s10 }
   0x6   :  { %3232 = sst [smem:[#allocation31_spill]] %s3207_s11 }
   0x7   :  { %3233 = sst [smem:[#allocation32_spill]] %s3208_s12 }
   0x8   :  { %3234 = sst [smem:[#allocation33_spill]] %s3209_s13 }
   0x9   :  { %3235 = sst [smem:[#allocation34_spill]] %s3212_s16 }
   0xa   :  { %3236 = sst [smem:[#allocation35_spill]] %s3213_s17 }
   0xb   :  { %3237 = sst [smem:[#allocation36_spill]] %s3214_s18 }
   0xc   :  { %23 = vsyncpa [#allocation5], 0 }
   0xd   :  { %25 = vsyncpa [#allocation5 + $0x1], 0 }
   0xe   :  { %26 = vsyncpa [#allocation8], 0 }
   0xf   :  { %28 = vsyncpa [#allocation8 + $0x1], 0 }
  0x10   :  { %29 = vsyncpa [#allocation11], 0 }
  0x11   :  { %30 = vsyncpa [#allocation6], 0 }
  0x12   :  { %32 = vsyncpa [#allocation6 + $0x1], 0  ;;  %s2767_s27 = smov 0   ;;  %s2769_s28 = smov 0  }
  0x13   :  { %s2771_s29 = smov 0   ;;  %s2773_s30 = smov 0  }
  0x14   :  { %s2775_s0 = smov 0   ;;  %s2777_s19 = smov 0  }
  0x15 LB: > { %3238 = sst [smem:[#allocation18_spill]] %s2635_s27  ;;  %s2798_s1 = sadd.s32 4294967295, %s2655_s19   ;;  %s2655_s19 = sphi %s2777_s19, %s38_s19   ;;  %s2651_s0 = sphi %s2775_s0, %s3282_s0   ;;  %s2647_s30 = sphi %s2773_s30, %s3281_s30   ;;  %s2643_s29 = sphi %s2771_s29, %s3277_s29   ;;  %s2639_s28 = sphi %s2769_s28, %s3280_s28   ;;  %s2635_s27 = sphi %s2767_s27, %s3279_s27  }
  0x16   : > { %3239 = sst [smem:[#allocation19_spill]] %s2643_s29  ;;  %s2120_s20 = sadd.s32 4294967294, %s2655_s19  }
  0x17   : > { %3240 = sst [smem:[#allocation20_spill]] %s2647_s30  ;;  %p70_p0 = scmp.ne.s32.totalorder %s2639_s28, %s2635_s27 }
  0x18   : > { %3241 = sst [smem:[#allocation21_spill]] %s2655_s19  ;;  %p3219_p1 = scmp.eq.s32.totalorder %s2798_s1, 0 }
  0x19   : > { %p464_p3 = scmp.eq.s32.totalorder %s2120_s20, 1  ;;  %p2121_p5 = scmp.ge.s32.totalorder %s2655_s19, 1 }
  0x1a   : > { %p2807_p4 = por %p3219_p1, %p70_p0  ;;  %p471_p7 = scmp.lt.s32.totalorder %s2655_s19, 3 }
  0x1b   : > { %p2812_p6 = por %p464_p3, %p70_p0  ;;  %s2657_s23 = smov [#allocation9]  }
  0x1c   : > { %p2817_p8 = pnand %p2121_p5, %p471_p7  ;;  %s501_s24 = sshll.u32 %s2657_s23, 4  ;;  %s502_s24 = int_to_ptr.vmem [resolvable:$true] %s501_s24 }
  0x1d   : > { %s3243_s22 = scalar_select %p2812_p6, 1, 0 }
  0x1e   : > { %p2343_p9 = pneg %p2817_p8  ;;  %s2658_s26 = smov [#allocation10]  }
  0x1f   : > { %3244 = sst [smem:[#allocation22_spill]] %s3243_s22  ;;  %s517_s20 = sshll.u32 %s2658_s26, 4  ;;  %s518_s20 = int_to_ptr.vmem [resolvable:$true] %s517_s20 }
  0x20   : > { %p2826_p11 = pnand %p2343_p9, %p3219_p1  ;;  %s2466_s22 = scalar_lea.vmem %s502_s24, 512 }
  0x21   : > { %p2467_p13 = scmp.ne.s32.totalorder %s502_s24, %s2466_s22  ;;  %p2474_p5 = scmp.lt.s32.totalorder %s502_s24, %s502_s24 }
  0x22   : > { %p2457_p12 = pneg %p2826_p11  ;;  %p2475_p7 = scmp.lt.s32.totalorder %s2466_s22, %s2466_s22 }
  0x24   : > { %p2469_p0 = pnand %p2467_p13, %p2457_p12  ;;  %p2476_p10 = por %p2475_p7, %p2474_p5 }
  0x26   : > { %p2470_p3 = pneg %p2469_p0 }
  0x28   : > { %p2477_p9 = pnand %p2476_p10, %p2470_p3 }
  0x2a   : > { %2480 = shalt.err (!%p2477_p9)
}
  0x2b   : > { %s2659_s23 = smov 128   ;;  %s2660_s27 = smov 8  }
  0x2c   : > { %s3247_s8 = sld [smem:[#allocation29_spill]]  ;;  %s2492_s13 = scalar_lea.vmem %s518_s20, 512 }
  0x2d   : > { %p2493_p1 = scmp.ne.s32.totalorder %s518_s20, %s2492_s13  ;;  %p2500_p2 = scmp.lt.s32.totalorder %s518_s20, %s518_s20 }
  0x2e   : > { %p2501_p6 = scmp.lt.s32.totalorder %s2492_s13, %s2492_s13 }
  0x2f   : > { %p2495_p13 = pnand %p2493_p1, %p2457_p12 }
  0x30   : > { %p2502_p5 = por %p2501_p6, %p2500_p2 }
  0x31   : > { %p2496_p0 = pneg %p2495_p13 }
  0x32   : > { %2346 = dma.hbm_to_vmem [thread:$0]  (!%p2826_p11), %s3247_s8, 512, %s502_s24, [#allocation8], %s2659_s23, %s2659_s23, %s2660_s27  }
  0x33   : > { %p2503_p10 = pnand %p2502_p5, %p2496_p0 }
  0x35   : > { %2506 = shalt.err (!%p2503_p10)
}
  0x36   : > { %s3248_s10 = sld [smem:[#allocation30_spill]]  ;;  %s50_s13 = sadd.s32 1, %s2651_s0 }
  0x37   : > { %s57_s18 = sadd.s32 1, %s2643_s29  ;;  %p52_p1 = scmp.ge.s32.totalorder %s50_s13, 2 }
  0x38   : > { %p64_p2 = scmp.ne.s32.totalorder %s2643_s29, %s2639_s28  ;;  %p65_p6 = scmp.eq.s32.totalorder %s2655_s19, 0 }
  0x39   : > { %p2363_p12 = scmp.lt.s32.totalorder %s2655_s19, 2  ;;  %s3284_s13 = smov (%p52_p1, %s50_s13), 0 }
  0x3a   : > { %3249 = sst [smem:[#allocation23_spill]] %s3284_s13  ;;  %p66_p3 = por %p65_p6, %p64_p2 }
  0x3b   : > { %p3250_p7 = scmp.eq.s32.totalorder %s2798_s1, 1  ;;  %s54_s24 = ssub.s32 %s2651_s0, %s3284_s13 }
  0x3c   : > { %2349 = dma.hbm_to_vmem [thread:$0]  (!%p2826_p11), %s3248_s10, 512, %s518_s20, [#allocation11], %s2659_s23, %s2659_s23, %s2660_s27  }
  0x3d   : > { %p2858_p9 = por %p3250_p7, %p64_p2  ;;  %s2865_s25 = sand.u32 1, %s2643_s29  }
  0x3e   : > { %p55_p11 = scmp.eq.s32.totalorder %s54_s24, 0  ;;  %s2125_s27 = sshll.u32 %s2865_s25, 3 }
  0x3f   : > { %s3251_s11 = scalar_select %p2858_p9, 1, 0 }
  0x40   : > { %s2126_s20 = sshll.u32 %s2651_s0, 7  ;;  %s3254_s8 = sld [smem:[#allocation26_spill]] }
  0x41   : > { %3252 = sst [smem:[#allocation24_spill]] %s3251_s11  ;;  %s556_s30 = scalar_lea.vmem [#allocation4], %s2125_s27 }
  0x42   : > { %s2870_s23 = scalar_select %p55_p11, %s2643_s29, %s57_s18  }
  0x43   : > { %s563_s17 = sshll.u32 %s556_s30, 4  ;;  %p2877_p13 = pnand %p2363_p12, %p66_p3  ;;  %s564_s17 = int_to_ptr.vmem [resolvable:$true] %s563_s17 }
  0x44   : > { %3253 = sst [smem:[#allocation25_spill]] %s2870_s23  ;;  %s570_s13 = sand.u32 1, %s2655_s19  }
  0x45   : > { %s553_s24 = scalar_lea.sflag [#allocation5], %s2865_s25  ;;  %p2509_p0 = pneg %p2877_p13 }
  0x46   : > { %s561_s10 = scalar_lea.hbm %s3254_s8, %s2126_s20  ;;  %s2520_s18 = scalar_lea.vmem %s564_s17, 128 }
  0x47   : > { %p2521_p5 = scmp.ne.s32.totalorder %s564_s17, %s2520_s18  ;;  %s2661_s8 = smov [#allocation4]  }
  0x48   : > { %s2525_s30 = sshll.u32 %s2661_s8, 4  ;;  %s2526_s30 = int_to_ptr.vmem [resolvable:$false] %s2525_s30 }
  0x49   : > { %p2523_p10 = pnand %p2521_p5, %p2509_p0  ;;  %s2527_s27 = scalar_lea.vmem %s2526_s30, 256 }
  0x4a   : > { %p2528_p2 = scmp.lt.s32.totalorder %s564_s17, %s2526_s30  ;;  %p2529_p6 = scmp.lt.s32.totalorder %s2527_s27, %s2520_s18 }
  0x4b   : > { %p2524_p1 = pneg %p2523_p10 }
  0x4c   : > { %p2530_p12 = por %p2529_p6, %p2528_p2 }
  0x4e   : > { %p2531_p3 = pnand %p2530_p12, %p2524_p1 }
  0x50   : > { %2534 = shalt.err (!%p2531_p3)
}
  0x51   : > { %2353 = dma.hbm_to_vmem [thread:$0]  (!%p2877_p13), %s561_s10, 128, %s564_s17, %s553_s24  }
  0x52   : > { %s2127_s20 = sshll.u32 %s2651_s0, 4  ;;  %s3256_s23 = sld [smem:[#allocation27_spill]] }
  0x53   : > { %s573_s19 = scalar_lea.vmem [#allocation7], %s2865_s25  ;;  %s571_s11 = scalar_lea.sflag [#allocation8], %s570_s13 }
  0x54   : > { %s580_s8 = sshll.u32 %s573_s19, 4  ;;  %s2662_s18 = smov [#allocation7]   ;;  %s581_s8 = int_to_ptr.vmem [resolvable:$true] %s580_s8 }
  0x55   : > { %s2548_s30 = scalar_lea.vmem %s581_s8, 16  ;;  %s2553_s27 = sshll.u32 %s2662_s18, 4  ;;  %s2554_s27 = int_to_ptr.vmem [resolvable:$false] %s2553_s27 }
  0x56   : > { %p2549_p7 = scmp.ne.s32.totalorder %s581_s8, %s2548_s30  ;;  %s2555_s12 = scalar_lea.vmem %s2554_s27, 32 }
  0x57   : > { %p2556_p10 = scmp.lt.s32.totalorder %s581_s8, %s2554_s27  ;;  %p2557_p1 = scmp.lt.s32.totalorder %s2555_s12, %s2548_s30 }
  0x58   : > { %s578_s29 = scalar_lea.hbm %s3256_s23, %s2127_s20  ;;  %p2551_p11 = pnand %p2549_p7, %p2509_p0 }
  0x59   : > { %p2558_p2 = por %p2557_p1, %p2556_p10 }
  0x5a   : > { %p2552_p5 = pneg %p2551_p11 }
  0x5c   : > { %p2559_p6 = pnand %p2558_p2, %p2552_p5 }
  0x5e   : > { %2562 = shalt.err (!%p2559_p6)
}
  0x5f   : > { %2356 = dma.hbm_to_vmem [thread:$0]  (!%p2877_p13), %s578_s29, 16, %s581_s8, %s571_s11  }
  0x60   : > { %589 = sbr.rel (%p2817_p8) target bundleno = 2554 (0x9fa), region = 92  ;;  %s2903_s10 = sand.u32 (!%p2817_p8), 1, %s2639_s28  }
  0x61   : > { %s2129_s17 = sshll.u32 (!%p2817_p8), %s2903_s10, 3  ;;  %s592_s19 = scalar_lea.sflag (!%p2817_p8), [#allocation5], %s2903_s10 }
  0x62   : > { %s595_s12 = scalar_lea.vmem (!%p2817_p8), [#allocation4], %s2129_s17 }
  0x65   : > { %2614 = dma.done.wait (%p2807_p4), %s592_s19, 128  }
  0x66   : > { %2616 = vsyncadd (%p2807_p4), %s592_s19, 4294967168  ;;  %s600_s16 = sand.u32 1, %s2798_s1   ;;  %s603_s2 = scalar_lea.vmem [#allocation7], %s2903_s10 }
  0x67   : > { %s601_s29 = scalar_lea.sflag [#allocation8], %s600_s16 }
  0x68   : > { %2618 = dma.done.wait (%p2807_p4), %s601_s29, 16  }
  0x69   : > { %2620 = vsyncadd (%p2807_p4), %s601_s29, 4294967280  ;;  %p3257_p8 = scmp.eq.s32.totalorder %s2798_s1, 0 }
  0x6b   : > { %2622 = dma.done.wait (%p3257_p8), [#allocation8], 512   ;;  %p3258_p13 = pmov %p3257_p8 }
  0x6c   : > { %p3259_p0 = pmov %p3257_p8 }
  0x6d   : > { %2624 = vsyncadd (%p3258_p13), [#allocation8], 4294966784 }
  0x6e   : > { %2626 = dma.done.wait (%p3259_p0), [#allocation11], 512   ;;  %p3260_p12 = pmov %p3259_p0 }
  0x6f   : > { %vm675_vm0 = vcmask 261120   ;;  %v2927_v0 = vld [vmem:[%s595_s12] sm:$0xff]  ;;  %v2663_v13 = vmov 0.0   ;;  %s3261_s24 = sld [smem:[#allocation28_spill]]  ;;  %v712_v17 = vld [vmem:[%s3200_s4 + $0x8] sm:$0xff]  ;;  %vm2664_vm1 = vmmov 0  }
  0x70   : > { %2628 = vsyncadd (%p3260_p12), [#allocation11], 4294966784  ;;  %v676_v1 = vsel %vm675_vm0, %v2927_v0, 0.0  ;;  %v714_v12 = vld [vmem:[%s3200_s4 + $0x18] sm:$0xff]  ;;  %2215 = vmatprep.subr.mxu1 %v2663_v13  ;;  %v713_v14 = vld [vmem:[%s3200_s4 + $0x10] sm:$0xff]  ;;  %2237 = vmatprep.subr.mxu0 %v2663_v13  ;;  %vm1013_vm6 = vcmask 64512  }
  0x71   : > { %677 = vadd.xlane.f32.xlu0 %v676_v1  ;;  %2216 = vmatpush3.msra.mxu1 %v714_v12  ;;  %v711_v18 = vld [vmem:[%s3200_s4] sm:$0xff]  ;;  %v799_v44 = vld [vmem:[%s3202_s6 + $0x18] sm:$0xff]  ;;  %v798_v46 = vld [vmem:[%s3202_s6 + $0x10] sm:$0xff]  ;;  %s2665_s1 = smov 120   ;;  %s2666_s21 = smov 112   ;;  %vm1683_vm8 = vcmask 130048  }
  0x72   : > { %2217 = vmatprep.subr.mxu1 %v2663_v13  ;;  %2223 = vmatprep.mubr.msk.f32.mxu1 %vm2664_vm1, %v2663_v13  ;;  %v2163_v37 = vld [vmem:[%s3210_s14] ss:$0 sm:$0xff]  ;;  %v797_v48 = vld [vmem:[%s3202_s6 + $0x8] sm:$0xff]  ;;  %s2667_s13 = smov 104   ;;  %s2669_s11 = smov 16   ;;  %vm1685_vm9 = vcmask 195584  }
  0x73   : > { %2218 = vmatpush3.msra.mxu1 %v713_v14  ;;  %2245 = vmatprep.mubr.msk.f32.mxu0 %vm2664_vm1, %v2663_v13  ;;  %v2164_v40 = vld [vmem:[%s3211_s15] ss:$0 sm:$0xff]  ;;  %s2670_s25 = smov 24   ;;  %s3262_s8 = sld [smem:[#allocation32_spill]]  ;;  %vm1908_vm12 = vcmask 523264  }
  0x74   : > { %2219 = vmatprep.subr.mxu1 %v2663_v13  ;;  %v796_v50 = vld [vmem:[%s3202_s6] sm:$0xff]  ;;  %s3264_s23 = sld [smem:[#allocation35_spill]]  ;;  %s1985_s19 = scalar_lea.sflag [#allocation6], %s2903_s10 }
  0x75   : > { %883 = vadd.xlane.f32.xlu0 %v676_v1  ;;  %v920_v15 = vld [vmem:[%s3261_s24 + $0x18] sm:$0xff]  ;;  %v919_v16 = vld [vmem:[%s3261_s24 + $0x10] sm:$0xff]  ;;  %2220 = vmatpush3.msra.mxu1 %v712_v17  ;;  %v918_v19 = vld [vmem:[%s3261_s24 + $0x8] sm:$0xff]  ;;  %s3265_s22 = sld [smem:[#allocation20_spill]] }
  0x76   : > { %2238 = vmatpush3.msra.mxu0 %v920_v15  ;;  %2221 = vmatprep.subr.mxu1 %v2663_v13  ;;  %v917_v20 = vld [vmem:[%s3261_s24] sm:$0xff]  ;;  %s3266_s29 = sld [smem:[#allocation31_spill]] }
  0x77   : > { %2239 = vmatprep.subr.mxu0 %v2663_v13  ;;  %2222 = vmatpush3.msra.mxu1 %v711_v18  ;;  %v2133_v51 = vld [vmem:[%s3201_s5] ss:$0 sm:$0xff]  ;;  %s3269_s30 = sld [smem:[#allocation36_spill]] }
  0x78   : > { %2240 = vmatpush3.msra.mxu0 %v919_v16  ;;  %2226 = vmatprep.subr.mxu1 %v2663_v13  ;;  %v2137_v55 = vld [vmem:[%s3199_s3] ss:$0 sm:$0xff] }
  0x79   : > { %2241 = vmatprep.subr.mxu0 %v2663_v13  ;;  %v2135_v59 = vld [vmem:[%s3203_s7] ss:$0 sm:$0xff] }
  0x7a   : > { %2242 = vmatpush3.msra.mxu0 %v918_v19 }
  0x7b   : > { %2243 = vmatprep.subr.mxu0 %v2663_v13 }
  0x7c   : > { %2244 = vmatpush3.msra.mxu0 %v917_v20 }
  0x7d   : > { %2258 = vmatprep.subr.mxu0 %v2663_v13  ;;  %s3270_s18 = smov %s3269_s30 }
  0xfa   : > { %v678_v2 = vpop.xlane.xlu0 %677 }
  0xfb   : > { %v680_v3 = vmul.f32 0.03125, %v678_v2 }
  0xfd   : > { %v2932_v4 = vsub.f32 %v2927_v0, %v680_v3 }
  0xfe   : > { %v884_v5 = vpop.xlane.xlu0 %883 }
  0xff   : > { %v886_v6 = vmul.f32 0.03125, %v884_v5  ;;  %v682_v7 = vmul.f32 %v2932_v4, %v2932_v4  ;;  %v702_v38 = vmul.f32 %v2163_v37, %v2932_v4 }
 0x101   : > { %v2937_v8 = vsub.f32 %v2927_v0, %v886_v6  ;;  %v683_v9 = vsel %vm675_vm0, %v682_v7, 0.0 }
 0x102   : > { %684 = vadd.xlane.f32.xlu1 %v683_v9  ;;  %v697_v9 = vlaneseq }
 0x103   : > { %v888_v10 = vmul.f32 %v2937_v8, %v2937_v8  ;;  %v908_v42 = vmul.f32 %v2163_v37, %v2937_v8 }
 0x105   : > { %v889_v11 = vsel %vm675_vm0, %v888_v10, 0.0  ;;  %v1002_v10 = vld [vmem:[%s603_s2] sm:$0x1]  ;;  %s2668_s2 = smov 8  }
 0x106   : > { %890 = vadd.xlane.f32.xlu1 %v889_v11  ;;  %v698_v11 = vshrl.u32 %v697_v9, 7  ;;  %vm1003_vm7 = vcmp.eq.f32.partialorder %v1002_v10, 0.0 }
 0x107   : > { %v1004_v14 = vsel %vm1003_vm7, -1e+09, %v2663_v13 }
 0x108   : > { %v699_v12 = vsub.s32 0, %v698_v11 }
 0x10a   : > { %v1011_v15 = vrot.slane %v1004_v14, %v699_v12  ;;  %v1687_v14 = vld [vmem:[#allocation9] sm:$0xff] }
 0x18b   : > { %v685_v21 = vpop.xlane.xlu1 %684 }
 0x18c   : > { %v686_v22 = vmul.f32 0.032258064, %v685_v21 }
 0x18e   : > { %2427 = vrsqrt.f32 %v686_v22  ;;  %vm689_vm2 = vcmp.eq.f32.partialorder %v686_v22, inf  ;;  %v692_v27 = vand.u32 2147483648, %v686_v22  ;;  %vm691_vm3 = vcmp.eq.f32.partialorder %v686_v22, 0.0 }
 0x18f   : > { %v891_v23 = vpop.xlane.xlu1 %890 }
 0x190   : > { %v892_v24 = vmul.f32 0.032258064, %v891_v23 }
 0x192   : > { %2429 = vrsqrt.f32 %v892_v24  ;;  %vm895_vm4 = vcmp.eq.f32.partialorder %v892_v24, inf  ;;  %v898_v33 = vand.u32 2147483648, %v892_v24  ;;  %vm897_vm5 = vcmp.eq.f32.partialorder %v892_v24, 0.0 }
 0x19b   : > { %v2428_v25 = vpop.eup %2427 }
 0x19c   : > { %v688_v26 = vmul.f32 %v2428_v25, %v686_v22 }
 0x19e   : > { %v690_v28 = vsel %vm689_vm2, %v686_v22, %v688_v26 }
 0x19f   : > { %v2430_v29 = vpop.eup %2429  ;;  %v693_v30 = vsel %vm691_vm3, %v692_v27, %v690_v28 }
 0x1a0   : > { %v694_v31 = vadd.f32 1e-06, %v693_v30  ;;  %v894_v32 = vmul.f32 %v2430_v29, %v892_v24 }
 0x1a2   : > { %2431 = vrcp.f32 %v694_v31  ;;  %v896_v34 = vsel %vm895_vm4, %v892_v24, %v894_v32 }
 0x1a3   : > { %v899_v35 = vsel %vm897_vm5, %v898_v33, %v896_v34 }
 0x1a4   : > { %v900_v36 = vadd.f32 1e-06, %v899_v35 }
 0x1a6   : > { %2433 = vrcp.f32 %v900_v36 }
 0x1af   : > { %v2432_v39 = vpop.eup %2431 }
 0x1b0   : > { %v703_v41 = vmul.f32 %v2432_v39, %v702_v38 }
 0x1b2   : > { %v710_v43 = vadd.f32 %v2164_v40, %v703_v41 }
 0x1b3   : > { %v2434_v45 = vpop.eup %2433 }
 0x1b4   : > { %2224 = vmatmul.mubr.msk.f32.vlgmr.msra.gmra.mxu1 %vm675_vm0, %v710_v43  ;;  %v909_v47 = vmul.f32 %v2434_v45, %v908_v42 }
 0x1b5   : > { %2227 = vmatpush3.msra.mxu1 %v799_v44  ;;  %2234 = vmatprep.mubr.msk.f32.mxu1 %vm2664_vm1, %v2663_v13 }
 0x1b6   : > { %2228 = vmatprep.subr.mxu1 %v2663_v13  ;;  %v916_v49 = vadd.f32 %v2164_v40, %v909_v47 }
 0x1b7   : > { %2229 = vmatpush3.msra.mxu1 %v798_v46 }
 0x1b8   : > { %2230 = vmatprep.subr.mxu1 %v2663_v13  ;;  %2246 = vmatmul.mubr.msk.f32.vlgmr.msra.gmra.mxu0 %vm675_vm0, %v916_v49 }
 0x1b9   : > { %2231 = vmatpush3.msra.mxu1 %v797_v48  ;;  %2260 = vmatprep.mubr.msk.f32.mxu0 %vm2664_vm1, %v2663_v13 }
 0x1ba   : > { %2232 = vmatprep.subr.mxu1 %v2663_v13 }
 0x1bb   : > { %2233 = vmatpush3.msra.mxu1 %v796_v50 }
 0x1bc   : > { %2235 = vmatmul.mubr.msk.f32.vlgmr.msra.gmra.mxu1 %vm675_vm0, %v710_v43  ;;  %2248 = vmatprep.subr.mxu1 %v2663_v13 }
 0x1bd   : > { %2250 = vmatprep.mubr.msk.f32.mxu1 %vm2664_vm1, %v2663_v13 }
 0x274   : > { %v791_v52 = vpop.f32.mrf.mxu1 }
 0x275   : > { %v792_v53 = vadd.f32 %v2133_v51, %v791_v52 }
 0x276   : > { %v2225_v54 = vpop.f32.mrf.mxu1 }
 0x277   : > { %795 = vst.msk [vmem:[#allocation2] sm:$0xff] %vm675_vm0, %v792_v53 }
 0x278   : > { %v997_v56 = vpop.f32.mrf.mxu0 }
 0x279   : > { %v998_v57 = vadd.f32 %v2137_v55, %v997_v56 }
 0x27a   : > { %v2247_v58 = vpop.f32.mrf.mxu0 }
 0x27b   : > { %v1001_v60 = vmul.f32 0.35355338, %v998_v57 }
 0x27c   : > { %v873_v61 = vpop.f32.mrf.mxu1 }
 0x27d   : > { %v874_v62 = vadd.f32 %v2135_v59, %v873_v61  ;;  %1174 = vrot.lane.b32.xlu1 %v1001_v60, %s2665_s1 }
 0x27e   : > { %v2236_v63 = vpop.f32.mrf.mxu1  ;;  %v1005_v1 = vld [vmem:[#allocation2] sm:$0xff] }
 0x27f   : > { %877 = vst.msk [vmem:[#allocation3] sm:$0xff] %vm675_vm0, %v874_v62  ;;  %1176 = vrot.lane.b32.xlu0 %v1005_v1, %s2665_s1  ;;  %2249 = vmatpush3.xpose.msk.msra.mxu1 %vm1013_vm6, %v1005_v1 }
 0x280   : > { %2253 = vmatprep.subr.mxu1 %v2663_v13 }
 0x281   : > { %1342 = vrot.lane.b32.xlu1 %v1005_v1, %s2666_s21 }
 0x282   : > { %2251 = vmatmul.mubr.msk.f32.vlgmr.msra.gmra.mxu1 %vm1013_vm6, %v1001_v60 }
 0x283   : > { %1507 = vrot.lane.b32.xlu0 %v1005_v1, %s2667_s13  ;;  %2255 = vmatprep.mubr.msk.f32.mxu1 %vm2664_vm1, %v2663_v13 }
 0x285   : > { %1340 = vrot.lane.b32.xlu1 %v1001_v60, %s2666_s21 }
 0x286   : > { %v3035_v2 = vld [vmem:[#allocation3] sm:$0xff] }
 0x287   : > { %2254 = vmatpush3.msra.mxu1 %v3035_v2 }
 0x288   : > { %2263 = vmatprep.subr.mxu1 %v2663_v13 }
 0x289   : > { %1505 = vrot.lane.b32.xlu1 %v1001_v60, %s2667_s13 }
 0x2ef   : > { %v1175_v3 = vpop.permute.xlu1 %1174 }
 0x2f1   : > { %v1177_v4 = vpop.permute.xlu0 %1176 }
 0x2f2   : > { %2259 = vmatpush3.xpose.msk.msra.mxu0 %vm1013_vm6, %v1177_v4 }
 0x2f3   : > { %v1343_v5 = vpop.permute.xlu1 %1342  ;;  %2268 = vmatprep.subr.mxu0 %v2663_v13 }
 0x2f5   : > { %2261 = vmatmul.mubr.msk.f32.vlgmr.msra.gmra.mxu0 %vm1013_vm6, %v1175_v3  ;;  %v1508_v7 = vpop.permute.xlu0 %1507 }
 0x2f6   : > { %2269 = vmatpush3.xpose.msk.msra.mxu0 %vm1013_vm6, %v1343_v5  ;;  %2270 = vmatprep.mubr.msk.f32.mxu0 %vm2664_vm1, %v2663_v13 }
 0x2f7   : > { %v1341_v6 = vpop.permute.xlu1 %1340  ;;  %2278 = vmatprep.subr.mxu0 %v2663_v13 }
 0x2f9   : > { %2271 = vmatmul.mubr.msk.f32.vlgmr.msra.gmra.mxu0 %vm1013_vm6, %v1341_v6  ;;  %v1690_v6 = vld [vmem:[#allocation9 + $0x18] sm:$0xff] }
 0x2fa   : > { %2279 = vmatpush3.xpose.msk.msra.mxu0 %vm1013_vm6, %v1508_v7  ;;  %2280 = vmatprep.mubr.msk.f32.mxu0 %vm2664_vm1, %v2663_v13  ;;  %v1689_v7 = vld [vmem:[#allocation9 + $0x10] sm:$0xff] }
 0x2fb   : > { %v1506_v8 = vpop.permute.xlu1 %1505  ;;  %2288 = vmatprep.subr.mxu0 %v2663_v13 }
 0x2fd   : > { %2281 = vmatmul.mubr.msk.f32.vlgmr.msra.gmra.mxu0 %vm1013_vm6, %v1506_v8  ;;  %v1688_v8 = vld [vmem:[#allocation9 + $0x8] sm:$0xff] }
 0x2fe   : > { %2296 = vmatprep.mubr.msk.f32.mxu0 %vm2664_vm1, %v2663_v13  ;;  %2289 = vmatpush3.msra.mxu0 %v1690_v6 }
 0x2ff   : > { %2290 = vmatprep.subr.mxu0 %v2663_v13 }
 0x300   : > { %2291 = vmatpush3.msra.mxu0 %v1689_v7 }
 0x301   : > { %2292 = vmatprep.subr.mxu0 %v2663_v13 }
 0x302   : > { %2293 = vmatpush3.msra.mxu0 %v1688_v8 }
 0x303   : > { %2294 = vmatprep.subr.mxu0 %v2663_v13 }
 0x304   : > { %2295 = vmatpush3.msra.mxu0 %v1687_v14 }
 0x305   : > { %2310 = vmatprep.subr.mxu0 %v2663_v13 }
 0x342   : > { %v1086_v16 = vpop.f32.mrf.mxu1 }
 0x343   : > { %v1087_v17 = vadd.f32 %v1086_v16, %v1011_v15 }
 0x344   : > { %v2252_v18 = vpop.f32.mrf.mxu1 }
 0x345   : > { %v1090_v19 = vsel %vm1013_vm6, %v1087_v17, -inf }
 0x346   : > { %1091 = vmax.xlane.f32.xlu0 %v1090_v19 }
 0x3b5   : > { %v1248_v20 = vpop.f32.mrf.mxu0 }
 0x3b6   : > { %v1249_v21 = vadd.f32 %v1248_v20, %v1011_v15 }
 0x3b7   : > { %v2262_v22 = vpop.f32.mrf.mxu0 }
 0x3b8   : > { %v1252_v23 = vsel %vm1013_vm6, %v1249_v21, -inf }
 0x3b9   : > { %1253 = vmax.xlane.f32.xlu1 %v1252_v23  ;;  %v1414_v24 = vpop.f32.mrf.mxu0  ;;  %v2151_v23 = vld [vmem:[%s3205_s9] ss:$0 sm:$0xff] }
 0x3ba   : > { %v1415_v25 = vadd.f32 %v1414_v24, %v1011_v15 }
 0x3bb   : > { %v2272_v26 = vpop.f32.mrf.mxu0 }
 0x3bc   : > { %v1418_v27 = vsel %vm1013_vm6, %v1415_v25, -inf }
 0x3bd   : > { %v1579_v28 = vpop.f32.mrf.mxu0  ;;  %1419 = vmax.xlane.f32.xlu0 %v1418_v27 }
 0x3be   : > { %v1580_v29 = vadd.f32 %v1579_v28, %v1011_v15 }
 0x3bf   : > { %v2282_v30 = vpop.f32.mrf.mxu0 }
 0x3c0   : > { %v1583_v31 = vsel %vm1013_vm6, %v1580_v29, -inf }
 0x3c1   : > { %1584 = vmax.xlane.f32.xlu0 %v1583_v31 }
 0x3cf   : > { %v1092_v32 = vpop.xlane.xlu0 %1091 }
 0x3d0   : > { %v1093_v33 = vsub.f32 %v1087_v17, %v1092_v32 }
 0x3d2   : > { %v1094_v34 = vmul.f32 1.442695, %v1093_v33 }
 0x3d4   : > { %2435 = vpow2.f32 %v1094_v34  ;;  %v1811_v34 = vld [vmem:[#allocation10 + $0x18] sm:$0xff] }
 0x3e1   : > { %v2436_v35 = vpop.eup %2435 }
 0x3e2   : > { %v1096_v36 = vsel %vm1013_vm6, %v2436_v35, 0.0 }
 0x3e3   : > { %1097 = vadd.xlane.f32.xlu0 %v1096_v36  ;;  %v1809_v36 = vld [vmem:[#allocation10 + $0x8] sm:$0xff] }
 0x442   : > { %v1254_v37 = vpop.xlane.xlu1 %1253 }
 0x443   : > { %v1255_v38 = vsub.f32 %v1249_v21, %v1254_v37  ;;  %v1900_v37 = vld [vmem:[%s3262_s8 + $0x38] sm:$0xff] }
 0x445   : > { %v1256_v39 = vmul.f32 1.442695, %v1255_v38  ;;  %v1899_v38 = vld [vmem:[%s3262_s8 + $0x30] sm:$0xff] }
 0x446   : > { %v1420_v40 = vpop.xlane.xlu0 %1419 }
 0x447   : > { %2437 = vpow2.f32 %v1256_v39  ;;  %v1421_v41 = vsub.f32 %v1415_v25, %v1420_v40  ;;  %v1898_v39 = vld [vmem:[%s3262_s8 + $0x28] sm:$0xff]  ;;  %v1897_v40 = vld [vmem:[%s3262_s8 + $0x20] sm:$0xff] }
 0x449   : > { %v1422_v42 = vmul.f32 1.442695, %v1421_v41  ;;  %v1896_v41 = vld [vmem:[%s3262_s8 + $0x18] sm:$0xff] }
 0x44a   : > { %v1585_v47 = vpop.xlane.xlu0 %1584 }
 0x44b   : > { %2439 = vpow2.f32 %v1422_v42  ;;  %v1586_v49 = vsub.f32 %v1580_v29, %v1585_v47 }
 0x44d   : > { %v1587_v50 = vmul.f32 1.442695, %v1586_v49 }
 0x454   : > { %v2438_v43 = vpop.eup %2437 }
 0x455   : > { %v1258_v44 = vsel %vm1013_vm6, %v2438_v43, 0.0 }
 0x456   : > { %1259 = vadd.xlane.f32.xlu1 %v1258_v44 }
 0x458   : > { %v2440_v45 = vpop.eup %2439 }
 0x459   : > { %v1424_v46 = vsel %vm1013_vm6, %v2440_v45, 0.0 }
 0x45a   : > { %1425 = vadd.xlane.f32.xlu0 %v1424_v46 }
 0x467   : > { %1429 = vrot.lane.b32.xlu1 %v3035_v2, %s2666_s21 }
 0x46c   : > { %v1098_v48 = vpop.xlane.xlu0 %1097 }
 0x46d   : > { %2441 = vrcp.f32 %v1098_v48 }
 0x46e   : > { %2443 = vpow2.f32 %v1587_v50 }
 0x470   : > { %1264 = vrot.lane.b32.xlu0 %v3035_v2, %s2665_s1 }
 0x47a   : > { %v2442_v51 = vpop.eup %2441 }
 0x47b   : > { %v1100_v52 = vmul.f32 %v2442_v51, %v2436_v35  ;;  %v2444_v53 = vpop.eup %2443  ;;  %v1810_v35 = vld [vmem:[#allocation10 + $0x10] sm:$0xff] }
 0x47c   : > { %v1589_v54 = vsel %vm1013_vm6, %v2444_v53, 0.0 }
 0x47d   : > { %2256 = vmatmul.mubr.msk.f32.vlgmr.msra.gmra.mxu1 %vm1013_vm6, %v1100_v52 }
 0x47e   : > { %2265 = vmatprep.mubr.msk.f32.mxu1 %vm2664_vm1, %v2663_v13 }
 0x48b   : > { %1590 = vadd.xlane.f32.xlu1 %v1589_v54 }
 0x49c   : > { %1594 = vrot.lane.b32.xlu1 %v3035_v2, %s2667_s13 }
 0x4df   : > { %v1260_v55 = vpop.xlane.xlu1 %1259 }
 0x4e0   : > { %2445 = vrcp.f32 %v1260_v55 }
 0x4e3   : > { %v1426_v56 = vpop.xlane.xlu0 %1425  ;;  %v1430_v60 = vpop.permute.xlu1 %1429 }
 0x4e4   : > { %2447 = vrcp.f32 %v1426_v56  ;;  %v1895_v56 = vld [vmem:[%s3262_s8 + $0x10] sm:$0xff] }
 0x4e7   : > { %v1265_v57 = vpop.permute.xlu0 %1264 }
 0x4e8   : > { %2264 = vmatpush3.msra.mxu1 %v1265_v57  ;;  %v1894_v57 = vld [vmem:[%s3262_s8 + $0x8] sm:$0xff] }
 0x4e9   : > { %2273 = vmatprep.subr.mxu1 %v2663_v13 }
 0x4ed   : > { %v2446_v58 = vpop.eup %2445 }
 0x4ee   : > { %v1262_v59 = vmul.f32 %v2446_v58, %v2438_v43  ;;  %v1893_v58 = vld [vmem:[%s3262_s8] sm:$0xff] }
 0x4f0   : > { %2266 = vmatmul.mubr.msk.f32.vlgmr.msra.gmra.mxu1 %vm1013_vm6, %v1262_v59  ;;  %v2155_v59 = vld [vmem:[%s3266_s29] ss:$0 sm:$0xff] }
 0x4f1   : > { %v2448_v61 = vpop.eup %2447  ;;  %2274 = vmatpush3.msra.mxu1 %v1430_v60  ;;  %2275 = vmatprep.mubr.msk.f32.mxu1 %vm2664_vm1, %v2663_v13 }
 0x4f2   : > { %v1428_v62 = vmul.f32 %v2448_v61, %v2440_v45  ;;  %2283 = vmatprep.subr.mxu1 %v2663_v13 }
 0x4f4   : > { %2276 = vmatmul.mubr.msk.f32.vlgmr.msra.gmra.mxu1 %vm1013_vm6, %v1428_v62 }
 0x4f5   : > { %2285 = vmatprep.mubr.msk.f32.mxu1 %vm2664_vm1, %v2663_v13 }
 0x514   : > { %v1591_v63 = vpop.xlane.xlu1 %1590 }
 0x515   : > { %2449 = vrcp.f32 %v1591_v63 }
 0x518   : > { %v1595_v1 = vpop.permute.xlu1 %1594 }
 0x519   : > { %2284 = vmatpush3.msra.mxu1 %v1595_v1 }
 0x51a   : > { %2299 = vmatprep.subr.mxu1 %v2663_v13 }
 0x522   : > { %v2450_v2 = vpop.eup %2449 }
 0x523   : > { %v1593_v3 = vmul.f32 %v2450_v2, %v2444_v53  ;;  %v2154_v53 = vld [vmem:[%s3264_s23] ss:$0 sm:$0xff] }
 0x525   : > { %2286 = vmatmul.mubr.msk.f32.vlgmr.msra.gmra.mxu1 %vm1013_vm6, %v1593_v3 }
 0x526   : > { %2307 = vmatprep.mubr.msk.f32.mxu1 %vm2664_vm1, %v2663_v13  ;;  %2300 = vmatpush3.msra.mxu1 %v1811_v34 }
 0x527   : > { %2301 = vmatprep.subr.mxu1 %v2663_v13 }
 0x528   : > { %2302 = vmatpush3.msra.mxu1 %v1810_v35 }
 0x529   : > { %2303 = vmatprep.subr.mxu1 %v2663_v13 }
 0x52a   : > { %2304 = vmatpush3.msra.mxu1 %v1809_v36 }
 0x52b   : > { %2305 = vmatprep.subr.mxu1 %v2663_v13 }
 0x53d   : > { %v1170_v4 = vpop.f32.mrf.mxu1 }
 0x53f   : > { %v2257_v5 = vpop.f32.mrf.mxu1 }
 0x5b0   : > { %v1336_v9 = vpop.f32.mrf.mxu1 }
 0x5b1   : > { %1671 = vrot.lane.b32.xlu1 %v1336_v9, %s2668_s2  ;;  %s3263_s2 = sld [smem:[#allocation34_spill]] }
 0x5b2   : > { %v2267_v10 = vpop.f32.mrf.mxu1 }
 0x5b4   : > { %v1501_v11 = vpop.f32.mrf.mxu1 }
 0x5b5   : > { %1675 = vrot.lane.b32.xlu0 %v1501_v11, %s2669_s11  ;;  %s2160_s11 = sshll.u32 %s3265_s22, 7  ;;  %s2671_s22 = smov [#allocation12]  }
 0x5b6   : > { %v2277_v12 = vpop.f32.mrf.mxu1  ;;  %s1997_s27 = scalar_lea.hbm %s3269_s30, %s2160_s11 }
 0x5b7   : > { %v2153_v50 = vld [vmem:[%s3263_s2] ss:$0 sm:$0xff]  ;;  %s3268_s2 = sld [smem:[#allocation33_spill]] }
 0x5bd   : > { %v2157_v1 = vld [vmem:[%s3268_s2] ss:$0 sm:$0xff] }
 0x5e5   : > { %v1666_v15 = vpop.f32.mrf.mxu1 }
 0x5e6   : > { %1679 = vrot.lane.b32.xlu1 %v1666_v15, %s2670_s25  ;;  %s667_s25 = scalar_lea.vmem [#allocation12], %s2129_s17  ;;  %s2567_s17 = sshll.u32 %s2671_s22, 4  ;;  %s2568_s17 = int_to_ptr.vmem [resolvable:$false] %s2567_s17 }
 0x5e7   : > { %v2287_v16 = vpop.f32.mrf.mxu1  ;;  %s1999_s23 = sshll.u32 %s667_s25, 4  ;;  %s2569_s16 = scalar_lea.vmem %s2568_s17, 256  ;;  %s2000_s23 = int_to_ptr.vmem [resolvable:$true] %s1999_s23 }
 0x5e8   : > { %s2563_s12 = scalar_lea.vmem %s2000_s23, 128  ;;  %p2570_p11 = scmp.lt.s32.totalorder %s2000_s23, %s2568_s17 }
 0x5e9   : > { %p2564_p4 = scmp.ne.s32.totalorder %s2000_s23, %s2563_s12  ;;  %p2571_p5 = scmp.lt.s32.totalorder %s2569_s16, %s2563_s12 }
 0x5eb   : > { %p2565_p3 = pnand %p2564_p4, %p2858_p9  ;;  %p2572_p10 = por %p2571_p5, %p2570_p11 }
 0x5ed   : > { %p2566_p7 = pneg %p2565_p3 }
 0x5ef   : > { %p2573_p1 = pnand %p2572_p10, %p2566_p7 }
 0x623   : > { %v1672_v17 = vpop.permute.xlu1 %1671 }
 0x624   : > { %v1682_v19 = vsel %vm1013_vm6, %v1170_v4, %v1672_v17 }
 0x627   : > { %v1676_v18 = vpop.permute.xlu0 %1675 }
 0x628   : > { %v1684_v20 = vsel %vm1683_vm8, %v1682_v19, %v1676_v18 }
 0x658   : > { %v1680_v21 = vpop.permute.xlu1 %1679 }
 0x659   : > { %v1686_v22 = vsel %vm1685_vm9, %v1684_v20, %v1680_v21 }
 0x65a   : > { %2297 = vmatmul.mubr.msk.f32.vlgmr.msra.gmra.mxu0 %vm675_vm0, %v1686_v22 }
 0x65b   : > { %2326 = vmatprep.mubr.msk.f32.mxu0 %vm2664_vm1, %v2663_v13  ;;  %2311 = vmatpush3.msra.mxu0 %v1900_v37 }
 0x65c   : > { %2312 = vmatprep.subr.mxu0 %v2663_v13 }
 0x65d   : > { %2313 = vmatpush3.msra.mxu0 %v1899_v38 }
 0x65e   : > { %2314 = vmatprep.subr.mxu0 %v2663_v13 }
 0x65f   : > { %2315 = vmatpush3.msra.mxu0 %v1898_v39 }
 0x660   : > { %2316 = vmatprep.subr.mxu0 %v2663_v13 }
 0x661   : > { %2317 = vmatpush3.msra.mxu0 %v1897_v40 }
 0x662   : > { %2318 = vmatprep.subr.mxu0 %v2663_v13 }
 0x663   : > { %2319 = vmatpush3.msra.mxu0 %v1896_v41 }
 0x664   : > { %2320 = vmatprep.subr.mxu0 %v2663_v13 }
 0x665   : > { %2321 = vmatpush3.msra.mxu0 %v1895_v56 }
 0x666   : > { %2322 = vmatprep.subr.mxu0 %v2663_v13 }
 0x667   : > { %2323 = vmatpush3.msra.mxu0 %v1894_v57 }
 0x668   : > { %2324 = vmatprep.subr.mxu0 %v2663_v13 }
 0x669   : > { %2325 = vmatpush3.msra.mxu0 %v1893_v58 }
 0x71a   : > { %v1767_v24 = vpop.f32.mrf.mxu0 }
 0x71b   : > { %v1768_v25 = vadd.f32 %v2151_v23, %v1767_v24 }
 0x71c   : > { %v2298_v26 = vpop.f32.mrf.mxu0 }
 0x71d   : > { %v3099_v27 = vadd.f32 %v1768_v25, %v2927_v0  ;;  %v1808_v0 = vld [vmem:[#allocation10] sm:$0xff] }
 0x71e   : > { %2306 = vmatpush3.msra.mxu1 %v1808_v0 }
 0x71f   : > { %v1774_v28 = vsel %vm675_vm0, %v3099_v27, 0.0 }
 0x720   : > { %1775 = vadd.xlane.f32.xlu0 %v1774_v28 }
 0x7a9   : > { %v1776_v29 = vpop.xlane.xlu0 %1775 }
 0x7aa   : > { %v1777_v30 = vmul.f32 0.03125, %v1776_v29 }
 0x7ac   : > { %v1778_v31 = vsub.f32 %v3099_v27, %v1777_v30 }
 0x7ae   : > { %v1779_v32 = vmul.f32 %v1778_v31, %v1778_v31  ;;  %v1799_v51 = vmul.f32 %v2153_v50, %v1778_v31 }
 0x7b0   : > { %v1780_v33 = vsel %vm675_vm0, %v1779_v32, 0.0 }
 0x7b1   : > { %1781 = vadd.xlane.f32.xlu1 %v1780_v33 }
 0x83a   : > { %v1782_v42 = vpop.xlane.xlu1 %1781 }
 0x83b   : > { %v1783_v43 = vmul.f32 0.032258064, %v1782_v42 }
 0x83d   : > { %2451 = vrsqrt.f32 %v1783_v43  ;;  %vm1786_vm10 = vcmp.eq.f32.partialorder %v1783_v43, inf  ;;  %v1789_v46 = vand.u32 2147483648, %v1783_v43  ;;  %vm1788_vm11 = vcmp.eq.f32.partialorder %v1783_v43, 0.0 }
 0x84a   : > { %v2452_v44 = vpop.eup %2451 }
 0x84b   : > { %v1785_v45 = vmul.f32 %v2452_v44, %v1783_v43 }
 0x84d   : > { %v1787_v47 = vsel %vm1786_vm10, %v1783_v43, %v1785_v45 }
 0x84e   : > { %v1790_v48 = vsel %vm1788_vm11, %v1789_v46, %v1787_v47 }
 0x84f   : > { %v1791_v49 = vadd.f32 1e-06, %v1790_v48 }
 0x851   : > { %2453 = vrcp.f32 %v1791_v49 }
 0x85e   : > { %v2454_v52 = vpop.eup %2453 }
 0x85f   : > { %v1800_v54 = vmul.f32 %v2454_v52, %v1799_v51 }
 0x861   : > { %v1807_v55 = vadd.f32 %v2154_v53, %v1800_v54 }
 0x863   : > { %2308 = vmatmul.mubr.msk.f32.vlgmr.msra.gmra.mxu1 %vm675_vm0, %v1807_v55 }
 0x923   : > { %v1888_v60 = vpop.f32.mrf.mxu1 }
 0x924   : > { %v1889_v61 = vadd.f32 %v2155_v59, %v1888_v60 }
 0x925   : > { %v2309_v62 = vpop.f32.mrf.mxu1 }
 0x926   : > { %v1892_v63 = vmax.f32 %v1889_v61, 0.0 }
 0x928   : > { %2327 = vmatmul.mubr.msk.f32.vlgmr.msra.gmra.mxu0 %vm1908_vm12, %v1892_v63 }
 0x9e8   : > { %v1978_v2 = vpop.f32.mrf.mxu0 }
 0x9e9   : > { %v1979_v13 = vadd.f32 %v2157_v1, %v1978_v2 }
 0x9ea   : > { %v2328_v3 = vpop.f32.mrf.mxu0 }
 0x9eb   : > { %v1982_v4 = vadd.f32 %v1979_v13, %v3099_v27 }
 0x9ed   : > { %1983 = vst.msk [vmem:[%s667_s25] sm:$0xff] %vm675_vm0, %v1982_v4 }
 0x9ee   : > { %2576 = shalt.err (!%p2573_p1)
}
 0x9ef   : > { %s2577_s29 = scalar_lea.hbm %s1997_s27, 128  ;;  %s2581_s13 = scalar_lea.hbm %s3270_s18, 256 }
 0x9f0   : > { %p2578_p2 = scmp.ne.s32.totalorder %s1997_s27, %s2577_s29  ;;  %p2582_p13 = scmp.lt.s32.totalorder %s1997_s27, %s3270_s18 }
 0x9f1   : > { %p2583_p0 = scmp.lt.s32.totalorder %s2581_s13, %s2577_s29 }
 0x9f2   : > { %p2579_p6 = pnand %p2578_p2, %p2858_p9 }
 0x9f3   : > { %p2584_p12 = por %p2583_p0, %p2582_p13 }
 0x9f4   : > { %p2580_p8 = pneg %p2579_p6 }
 0x9f6   : > { %p2585_p4 = pnand %p2584_p12, %p2580_p8 }
 0x9f8   : > { %2588 = shalt.err (!%p2585_p4)
}
 0x9f9   : > { %2341 = dma.vmem_to_hbm [thread:$0]  (%p2858_p9), %s2000_s23, 128, %s1997_s27, %s1985_s19  }
 0x9fa PF: > { %s3271_s25 = sld [smem:[#allocation18_spill]] }
 0x9fb   : > { %s3272_s20 = sld [smem:[#allocation22_spill]] }
 0x9fc   : > { %s3273_s26 = sld [smem:[#allocation21_spill]] }
 0xa00   : > { %s2011_s30 = sand.u32 1, %s3271_s25  }
 0xa01   : > { %p3274_p3 = scmp.ne.s32.totalorder %s3272_s20, 0  ;;  %s2012_s12 = scalar_lea.sflag [#allocation6], %s2011_s30 }
 0xa02   : > { %p3275_p7 = scmp.ge.s32.totalorder %s3273_s26, 2 }
 0xa04   : > { %p2358_p11 = pnand %p3275_p7, %p3274_p3 }
 0xa06   : > { %p2359_p5 = pneg %p2358_p11 }
 0xa08   : > { %2630 = dma.done.wait (%p2359_p5), %s2012_s12, 128  }
 0xa09   : > { %2632 = vsyncadd (%p2359_p5), %s2012_s12, 4294967168  ;;  %s38_s19 = sadd.s32 1, %s3273_s26   ;;  %s3276_s22 = sld [smem:[#allocation19_spill]] }
 0xa0a   : > { %p35_p10 = scmp.ge.s32.totalorder %s38_s19, 4   ;;  %s3277_s29 = sld [smem:[#allocation25_spill]] }
 0xa0b   : > { %s3278_s1 = sld [smem:[#allocation23_spill]]  ;;  %s3279_s27 = smov %s2639_s28 }
 0xa0c   : > { %s3281_s30 = smov %s2651_s0 }
 0xa0d   :  { %37 = sbr.rel (!%p35_p10) target bundleno = 21 (0x15), region = 163 }
 0xa0f   : > { %s3280_s28 = smov %s3276_s22 }
 0xa11   : > { %s3282_s0 = smov %s3278_s1 }
 0xa12   :  { %2017 = vsyncpa [#allocation5], 1 }
 0xa13   :  { %2019 = vsyncpa [#allocation5 + $0x1], 1 }
 0xa14   :  { %2020 = vsyncpa [#allocation8], 1 }
 0xa15   :  { %2022 = vsyncpa [#allocation8 + $0x1], 1 }
 0xa16   :  { %2023 = vsyncpa [#allocation11], 1 }
 0xa17   :  { %2024 = vsyncpa [#allocation6], 1 }
 0xa18   :  { %2026 = vsyncpa [#allocation6 + $0x1], 1 }

</bundles_post_ra>
